<compile_context>
chip_gen: v7x
topology: tpu7x:2x2x1
jax: 0.10.0
libtpu: 0.0.40
codegen_flags: <defaults>
</compile_context>

<pallas_src>
import functools

import jax
import jax.numpy as jnp
from jax.experimental import pallas as pl
from jax.experimental.pallas import tpu as pltpu


K1_PAD = 128      # conv1 im2col K (5*5*Cin = 100) zero-padded to a full lane width
HEADS_PAD = 128   # fused policy+value output width (n_actions + 1 = 7) padded to 128 lanes


# ----------------------------------------------------------------------------
# Fused forward kernel: one batch-block per grid step, everything in VMEM/vregs
# ----------------------------------------------------------------------------
def _fused_forward_kernel(p1_ref, w1_ref, b1_ref, w2_ref, b2_ref, wh_ref, bh_ref,
                          out_ref, y1_ref, *, nb, oh1, ow1, oh2, ow2):
    """Layout contract (established by forward() / prepare_kernel_params()):

      * p1 rows (per block) are ordered (h%2, h//2, w%2, w//2, sample) — parity-
        major spatial, sample-minor — with columns (kh, kw, cin).  y1 inherits the
        same row order, so for any conv2 tap (ki, kj) and output row oi the
        ow2*nb source rows are CONTIGUOUS in y1: every tap operand is one static
        row-slice load (aligned to (8,·) tiles whenever nb % 8 == 0).
      * w2_ref is (9, Cout1, Cout2) with taps in (ki, kj) order.
      * wh_ref is (oh2*ow2, Cout2, HEADS_PAD): the PyTorch NCHW .view(N,-1)
        permutation is folded into the head weights; the flatten is folded into
        the head matmul as a per-position accumulation (no scatter, no scratch).
    """
    # ---- conv1: (64*nb, 128) @ (128, 64) on the MXU, f32 accumulate ----
    a1 = jnp.dot(p1_ref[0], w1_ref[...], preferred_element_type=jnp.float32)
    y1_ref[...] = jnp.maximum(a1 + b1_ref[...], 0.0)        # the only scratch store

    # ---- conv2: 9 tap-accumulated matmuls, accumulators stay in vregs ----
    acc = [None] * oh2                                       # acc[oi]: (ow2*nb, Cout2) f32
    for ki in range(3):
        for kj in range(3):
            w2t = w2_ref[ki * 3 + kj]                        # (Cout1, Cout2) bf16
            woff = (kj % 2) * (ow1 // 2) + kj // 2
            for oi in range(oh2):
                hcode = (ki % 2) * (oh1 // 2) + oi + ki // 2
                src = (hcode * ow1 + woff) * nb              # static offset
                lhs = y1_ref[src:src + ow2 * nb, :].astype(jnp.bfloat16)
                d = jnp.dot(lhs, w2t, preferred_element_type=jnp.float32)
                acc[oi] = d if acc[oi] is None else acc[oi] + d

    # ---- conv2 bias + ReLU (f32, VPU), then fused policy+value head.
    #      The NCHW flatten is realized as 9 per-position head matmuls, so no
    #      relayout / flatten stores are needed. ----
    head = None
    for oi in range(oh2):
        y2 = jnp.maximum(acc[oi] + b2_ref[...], 0.0)         # (ow2*nb, Cout2) f32
        for oj in range(ow2):
            lhs = y2[oj * nb:(oj + 1) * nb, :].astype(jnp.bfloat16)
            d = jnp.dot(lhs, wh_ref[oi * ow2 + oj], preferred_element_type=jnp.float32)
            head = d if head is None else head + d
    out_ref[0] = head + bh_ref[...]                          # (nb, 128) lane-dense store


def fused_forward(p1, w1, b1, w2, b2, wh, bh, *, nb, oh1, ow1, oh2, ow2):
    nblk = p1.shape[0]
    cout1 = w1.shape[1]
    kernel = functools.partial(_fused_forward_kernel, nb=nb,
                               oh1=oh1, ow1=ow1, oh2=oh2, ow2=ow2)
    grid_spec = pltpu.PrefetchScalarGridSpec(
        num_scalar_prefetch=0,
        grid=(nblk,),                                        # batch-block grid (megacore)
        in_specs=[
            pl.BlockSpec((1, oh1 * ow1 * nb, K1_PAD), lambda i: (i, 0, 0)),  # p1 block
            pl.BlockSpec(w1.shape, lambda i: (0, 0)),        # weights broadcast over grid
            pl.BlockSpec(b1.shape, lambda i: (0, 0)),
            pl.BlockSpec(w2.shape, lambda i: (0, 0, 0)),
            pl.BlockSpec(b2.shape, lambda i: (0, 0)),
            pl.BlockSpec(wh.shape, lambda i: (0, 0, 0)),
            pl.BlockSpec(bh.shape, lambda i: (0, 0)),
        ],
        out_specs=pl.BlockSpec((1, nb, HEADS_PAD), lambda i: (i, 0, 0)),
        scratch_shapes=[pltpu.VMEM((oh1 * ow1 * nb, cout1), jnp.float32)],   # y1, per block
    )
    return pl.pallas_call(
        kernel,
        out_shape=jax.ShapeDtypeStruct((nblk, nb, HEADS_PAD), jnp.float32),
        grid_spec=grid_spec,
        compiler_params=pltpu.CompilerParams(dimension_semantics=("parallel",)),
    )(p1, w1, b1, w2, b2, wh, bh)


# ----------------------------------------------------------------------------
# Forward wrapper: cheap glue on the raw uint8 input (one reshape/transpose to
# build the non-overlapping conv1 patches in the kernel's row order), then the
# single fused kernel.
# ----------------------------------------------------------------------------
def forward(kparams, x_nchw, n_actions, samples_per_block=None):
    N, C, H, W = x_nchw.shape
    oh1, ow1 = (H - 5) // 5 + 1, (W - 5) // 5 + 1
    oh2, ow2 = (oh1 - 3) // 2 + 1, (ow1 - 3) // 2 + 1
    assert oh1 % 2 == 0 and ow1 % 2 == 0, "parity-major im2col needs even conv1 output"

    nb = samples_per_block
    if nb is None:
        nb = next(b for b in (8, 4, 2, 1) if N % b == 0)
    assert N % nb == 0, "pad the batch to a multiple of samples_per_block"
    nblk = N // nb

    # conv1 im2col: stride == kernel -> non-overlapping patches == pure reshape/transpose.
    # Row order per block = (h%2, h//2, w%2, w//2, sample); column order = (kh, kw, cin).
    # This is the layout contract the kernel's tap slices rely on.
    x = jnp.transpose(x_nchw, (0, 2, 3, 1))[:, :oh1 * 5, :ow1 * 5, :]        # NHWC uint8
    x = x.reshape(nblk, nb, oh1 // 2, 2, 5, ow1 // 2, 2, 5, C)               # b,n,h2,hp,kh,w2,wp,kw,c
    x = jnp.transpose(x, (0, 3, 2, 6, 5, 1, 4, 7, 8))                        # b,hp,h2,wp,w2,n,kh,kw,c
    p1 = x.reshape(nblk, oh1 * ow1 * nb, 5 * 5 * C)
    p1 = jnp.pad(p1, ((0, 0), (0, 0), (0, K1_PAD - 5 * 5 * C))).astype(jnp.bfloat16)

    out = fused_forward(p1, kparams["w1"], kparams["b1"], kparams["w2"], kparams["b2"],
                        kparams["wh"], kparams["bh"],
                        nb=nb, oh1=oh1, ow1=ow1, oh2=oh2, ow2=ow2)
    out = out.reshape(N, HEADS_PAD)
    return out[:, :n_actions], out[:, n_actions:n_actions + 1]


forward_jit = jax.jit(forward, static_argnames=("n_actions", "samples_per_block"))


# ----------------------------------------------------------------------------
# Parameters: PyTorch-layout originals (for the reference) + kernel-ready forms.
# ----------------------------------------------------------------------------
def init_params(key, in_channels, n_actions, conv_out_size):
    k = jax.random.split(key, 8)
    return dict(
        w1=0.05 * jax.random.normal(k[0], (64, in_channels, 5, 5), jnp.float32),
        b1=0.05 * jax.random.normal(k[1], (64,), jnp.float32),
        w2=0.05 * jax.random.normal(k[2], (64, 64, 3, 3), jnp.float32),
        b2=0.05 * jax.random.normal(k[3], (64,), jnp.float32),
        wp=0.05 * jax.random.normal(k[4], (n_actions, conv_out_size), jnp.float32),
        bp=0.05 * jax.random.normal(k[5], (n_actions,), jnp.float32),
        wv=0.05 * jax.random.normal(k[6], (1, conv_out_size), jnp.float32),
        bv=0.05 * jax.random.normal(k[7], (1,), jnp.float32),
    )


def prepare_kernel_params(pt, in_channels, n_actions, oh2, ow2):
    cin, cout1, cout2 = in_channels, 64, 64
    npos2, n_out = oh2 * ow2, n_actions + 1
    assert 5 * 5 * cin <= K1_PAD and n_out <= HEADS_PAD

    # conv1: (Cout,Cin,5,5) -> (kh*kw*cin, 64); fold 1/256; pad K to 128; bf16.
    w1 = jnp.transpose(pt["w1"], (2, 3, 1, 0)).reshape(5 * 5 * cin, cout1) / 256.0
    w1 = jnp.pad(w1, ((0, K1_PAD - 5 * 5 * cin), (0, 0))).astype(jnp.bfloat16)
    b1 = pt["b1"].reshape(1, cout1)

    # conv2: (Cout,Cin,3,3) -> (tap = ki*3+kj, cin, cout) = (9, 64, 64); bf16.
    w2 = jnp.transpose(pt["w2"], (2, 3, 1, 0)).reshape(9, cout1, cout2).astype(jnp.bfloat16)
    b2 = pt["b2"].reshape(1, cout2)

    # heads: fuse policy+value, go (out,in)->(in,out), permute rows from PyTorch
    # NCHW-flatten order (c, oi, oj) to (position p = oi*ow2+oj, c); pad to 128 lanes.
    wh = jnp.concatenate([pt["wp"], pt["wv"]], axis=0).T              # (576, n_out), rows c*9+p
    wh = wh.reshape(cout2, npos2, n_out).transpose(1, 0, 2)           # (npos2, cout2, n_out)
    wh = jnp.pad(wh, ((0, 0), (0, 0), (0, HEADS_PAD - n_out))).astype(jnp.bfloat16)
    bh = jnp.pad(jnp.concatenate([pt["bp"], pt["bv"]]), (0, HEADS_PAD - n_out)).reshape(1, HEADS_PAD)

    return dict(w1=w1, b1=b1, w2=w2, b2=b2, wh=wh, bh=bh)


# ----------------------------------------------------------------------------
# Pure-JAX f32 reference with PyTorch semantics (unfolded weights, lax conv).
# ----------------------------------------------------------------------------
def ref_forward(pt, x_nchw, n_actions):
    N = x_nchw.shape[0]
    x = x_nchw.astype(jnp.float32) / 256.0
    x = jnp.transpose(x, (0, 2, 3, 1))
    dn = ("NHWC", "HWIO", "NHWC")
    y1 = jax.lax.conv_general_dilated(x, jnp.transpose(pt["w1"], (2, 3, 1, 0)),
                                      (5, 5), "VALID", dimension_numbers=dn)
    y1 = jnp.maximum(y1 + pt["b1"], 0.0)
    y2 = jax.lax.conv_general_dilated(y1, jnp.transpose(pt["w2"], (2, 3, 1, 0)),
                                      (2, 2), "VALID", dimension_numbers=dn)
    y2 = jnp.maximum(y2 + pt["b2"], 0.0)
    flat = jnp.transpose(y2, (0, 3, 1, 2)).reshape(N, -1)             # NCHW .view(N, -1)
    return flat @ pt["wp"].T + pt["bp"], flat @ pt["wv"].T + pt["bv"]


if __name__ == "__main__":
    batch, in_channels, H, W = 2, 4, 40, 40
    n_actions = 6

    # geometry: 40 -(5,s5)-> 8 -(3,s2)-> 3  => conv_out_size = 64*3*3 = 576
    oh1, ow1 = (H - 5) // 5 + 1, (W - 5) // 5 + 1
    oh2, ow2 = (oh1 - 3) // 2 + 1, (ow1 - 3) // 2 + 1
    conv_out_size = 64 * oh2 * ow2

    key = jax.random.PRNGKey(0)
    kx, kp = jax.random.split(key)
    x = jax.random.randint(kx, (batch, in_channels, H, W), 0, 256,
                           dtype=jnp.int32).astype(jnp.uint8)
    pt = init_params(kp, in_channels, n_actions, conv_out_size)
    kparams = prepare_kernel_params(pt, in_channels, n_actions, oh2, ow2)

    ref_p, ref_v = ref_forward(pt, x, n_actions)

    # Exercise both the gridded path (1 sample/block -> grid=(2,), "parallel")
    # and the single-block path (whole batch in one step).
    for spb in (1, 2):
        policy, value = forward_jit(kparams, x, n_actions, samples_per_block=spb)
        policy, value = jax.block_until_ready((policy, value))
        assert policy.shape == (batch, n_actions) and value.shape == (batch, 1)
        # bf16 MXU operands (f32 accumulation) -> loosened tolerance vs the f32 reference.
        assert jnp.allclose(policy, ref_p, atol=3e-2, rtol=3e-2), \
            f"policy mismatch (spb={spb}): {jnp.max(jnp.abs(policy - ref_p))}"
        assert jnp.allclose(value, ref_v, atol=3e-2, rtol=3e-2), \
            f"value mismatch (spb={spb}): {jnp.max(jnp.abs(value - ref_v))}"

    print("KERNEL_OK")
</pallas_src>

<mosaic_0001>
module attributes {stable_mosaic.version = 11 : i64} {
  func.func @_fused_forward_kernel(%arg0: i32, %arg1: memref<1x64x128xbf16, #tpu.memory_space<vmem>>, %arg2: memref<128x64xbf16, #tpu.memory_space<vmem>>, %arg3: memref<1x64xf32, #tpu.memory_space<vmem>>, %arg4: memref<9x64x64xbf16, #tpu.memory_space<vmem>>, %arg5: memref<1x64xf32, #tpu.memory_space<vmem>>, %arg6: memref<9x64x128xbf16, #tpu.memory_space<vmem>>, %arg7: memref<1x128xf32, #tpu.memory_space<vmem>>, %arg8: memref<1x1x128xf32, #tpu.memory_space<vmem>>, %arg9: memref<64x64xf32, #tpu.memory_space<vmem>>) attributes {dimension_semantics = [#tpu.dimension_semantics<parallel>], iteration_bounds = array<i64: 2>, scalar_prefetch = 0 : i64, scratch_operands = 1 : i64, tpu.core_type = #tpu.core_type<tc>, window_params = [{transform_indices = @transform_0, window_bounds = array<i64: 1, 64, 128>}, {pipeline_mode = #tpu.pipeline_mode<synchronous>, transform_indices = @transform_1, window_bounds = array<i64: 128, 64>}, {pipeline_mode = #tpu.pipeline_mode<synchronous>, transform_indices = @transform_2, window_bounds = array<i64: 1, 64>}, {pipeline_mode = #tpu.pipeline_mode<synchronous>, transform_indices = @transform_3, window_bounds = array<i64: 9, 64, 64>}, {pipeline_mode = #tpu.pipeline_mode<synchronous>, transform_indices = @transform_4, window_bounds = array<i64: 1, 64>}, {pipeline_mode = #tpu.pipeline_mode<synchronous>, transform_indices = @transform_5, window_bounds = array<i64: 9, 64, 128>}, {pipeline_mode = #tpu.pipeline_mode<synchronous>, transform_indices = @transform_6, window_bounds = array<i64: 1, 128>}, {transform_indices = @transform_7, window_bounds = array<i64: 1, 1, 128>}]} {
    %c0 = arith.constant 0 : index
    %c0_0 = arith.constant 0 : index
    %c0_1 = arith.constant 0 : index
    %0 = vector.load %arg1[%c0, %c0_0, %c0_1] : memref<1x64x128xbf16, #tpu.memory_space<vmem>>, vector<1x64x128xbf16>
    %1 = vector.shape_cast %0 : vector<1x64x128xbf16> to vector<64x128xbf16>
    %c0_2 = arith.constant 0 : index
    %c0_3 = arith.constant 0 : index
    %2 = vector.load %arg2[%c0_2, %c0_3] : memref<128x64xbf16, #tpu.memory_space<vmem>>, vector<128x64xbf16>
    %cst = arith.constant dense<0.000000e+00> : vector<64x64xf32>
    %3 = tpu.matmul %1, %2, %cst {dimension_numbers = #tpu.dot_dimension_numbers<[1], [0], [0], [1], [0, 0, 1, 1], [], []>} : vector<64x128xbf16>, vector<128x64xbf16>, vector<64x64xf32> -> vector<64x64xf32>
    %c0_4 = arith.constant 0 : index
    %c0_5 = arith.constant 0 : index
    %4 = vector.load %arg3[%c0_4, %c0_5] : memref<1x64xf32, #tpu.memory_space<vmem>>, vector<1x64xf32>
    %5 = vector.broadcast %4 : vector<1x64xf32> to vector<64x64xf32>
    %6 = arith.addf %3, %5 : vector<64x64xf32>
    %cst_6 = arith.constant 0.000000e+00 : f32
    %7 = vector.broadcast %cst_6 : f32 to vector<64x64xf32>
    %8 = arith.maximumf %6, %7 : vector<64x64xf32>
    %c0_7 = arith.constant 0 : index
    %c0_8 = arith.constant 0 : index
    %9 = vector.load %arg9[%c0_7, %c0_8] : memref<64x64xf32, #tpu.memory_space<vmem>>, vector<64x64xf32>
    tpu.vector_store %arg9[%c0_7, %c0_8], %8 {strides = array<i32>} : memref<64x64xf32, #tpu.memory_space<vmem>>, vector<64x64xf32>,
    %c0_9 = arith.constant 0 : index
    %c0_10 = arith.constant 0 : index
    %c0_11 = arith.constant 0 : index
    %10 = vector.load %arg4[%c0_9, %c0_10, %c0_11] : memref<9x64x64xbf16, #tpu.memory_space<vmem>>, vector<1x64x64xbf16>
    %11 = vector.shape_cast %10 : vector<1x64x64xbf16> to vector<64x64xbf16>
    %c0_12 = arith.constant 0 : index
    %c0_13 = arith.constant 0 : index
    %12 = vector.load %arg9[%c0_12, %c0_13] : memref<64x64xf32, #tpu.memory_space<vmem>>, vector<3x64xf32>
    %13 = arith.truncf %12 : vector<3x64xf32> to vector<3x64xbf16>
    %cst_14 = arith.constant dense<0.000000e+00> : vector<3x64xf32>
    %14 = tpu.matmul %13, %11, %cst_14 {dimension_numbers = #tpu.dot_dimension_numbers<[1], [0], [0], [1], [0, 0, 1, 1], [], []>} : vector<3x64xbf16>, vector<64x64xbf16>, vector<3x64xf32> -> vector<3x64xf32>
    %c8 = arith.constant 8 : index
    %c0_15 = arith.constant 0 : index
    %15 = vector.load %arg9[%c8, %c0_15] : memref<64x64xf32, #tpu.memory_space<vmem>>, vector<3x64xf32>
    %16 = arith.truncf %15 : vector<3x64xf32> to vector<3x64xbf16>
    %cst_16 = arith.constant dense<0.000000e+00> : vector<3x64xf32>
    %17 = tpu.matmul %16, %11, %cst_16 {dimension_numbers = #tpu.dot_dimension_numbers<[1], [0], [0], [1], [0, 0, 1, 1], [], []>} : vector<3x64xbf16>, vector<64x64xbf16>, vector<3x64xf32> -> vector<3x64xf32>
    %c16 = arith.constant 16 : index
    %c0_17 = arith.constant 0 : index
    %18 = vector.load %arg9[%c16, %c0_17] : memref<64x64xf32, #tpu.memory_space<vmem>>, vector<3x64xf32>
    %19 = arith.truncf %18 : vector<3x64xf32> to vector<3x64xbf16>
    %cst_18 = arith.constant dense<0.000000e+00> : vector<3x64xf32>
    %20 = tpu.matmul %19, %11, %cst_18 {dimension_numbers = #tpu.dot_dimension_numbers<[1], [0], [0], [1], [0, 0, 1, 1], [], []>} : vector<3x64xbf16>, vector<64x64xbf16>, vector<3x64xf32> -> vector<3x64xf32>
    %c1 = arith.constant 1 : index
    %c0_19 = arith.constant 0 : index
    %c0_20 = arith.constant 0 : index
    %21 = vector.load %arg4[%c1, %c0_19, %c0_20] : memref<9x64x64xbf16, #tpu.memory_space<vmem>>, vector<1x64x64xbf16>
    %22 = vector.shape_cast %21 : vector<1x64x64xbf16> to vector<64x64xbf16>
    %c4 = arith.constant 4 : index
    %c0_21 = arith.constant 0 : index
    %23 = vector.load %arg9[%c4, %c0_21] : memref<64x64xf32, #tpu.memory_space<vmem>>, vector<3x64xf32>
    %24 = arith.truncf %23 : vector<3x64xf32> to vector<3x64xbf16>
    %cst_22 = arith.constant dense<0.000000e+00> : vector<3x64xf32>
    %25 = tpu.matmul %24, %22, %cst_22 {dimension_numbers = #tpu.dot_dimension_numbers<[1], [0], [0], [1], [0, 0, 1, 1], [], []>} : vector<3x64xbf16>, vector<64x64xbf16>, vector<3x64xf32> -> vector<3x64xf32>
    %26 = arith.addf %14, %25 : vector<3x64xf32>
    %c12 = arith.constant 12 : index
    %c0_23 = arith.constant 0 : index
    %27 = vector.load %arg9[%c12, %c0_23] : memref<64x64xf32, #tpu.memory_space<vmem>>, vector<3x64xf32>
    %28 = arith.truncf %27 : vector<3x64xf32> to vector<3x64xbf16>
    %cst_24 = arith.constant dense<0.000000e+00> : vector<3x64xf32>
    %29 = tpu.matmul %28, %22, %cst_24 {dimension_numbers = #tpu.dot_dimension_numbers<[1], [0], [0], [1], [0, 0, 1, 1], [], []>} : vector<3x64xbf16>, vector<64x64xbf16>, vector<3x64xf32> -> vector<3x64xf32>
    %30 = arith.addf %17, %29 : vector<3x64xf32>
    %c20 = arith.constant 20 : index
    %c0_25 = arith.constant 0 : index
    %31 = vector.load %arg9[%c20, %c0_25] : memref<64x64xf32, #tpu.memory_space<vmem>>, vector<3x64xf32>
    %32 = arith.truncf %31 : vector<3x64xf32> to vector<3x64xbf16>
    %cst_26 = arith.constant dense<0.000000e+00> : vector<3x64xf32>
    %33 = tpu.matmul %32, %22, %cst_26 {dimension_numbers = #tpu.dot_dimension_numbers<[1], [0], [0], [1], [0, 0, 1, 1], [], []>} : vector<3x64xbf16>, vector<64x64xbf16>, vector<3x64xf32> -> vector<3x64xf32>
    %34 = arith.addf %20, %33 : vector<3x64xf32>
    %c2 = arith.constant 2 : index
    %c0_27 = arith.constant 0 : index
    %c0_28 = arith.constant 0 : index
    %35 = vector.load %arg4[%c2, %c0_27, %c0_28] : memref<9x64x64xbf16, #tpu.memory_space<vmem>>, vector<1x64x64xbf16>
    %36 = vector.shape_cast %35 : vector<1x64x64xbf16> to vector<64x64xbf16>
    %c1_29 = arith.constant 1 : index
    %c0_30 = arith.constant 0 : index
    %37 = vector.load %arg9[%c1_29, %c0_30] : memref<64x64xf32, #tpu.memory_space<vmem>>, vector<3x64xf32>
    %38 = arith.truncf %37 : vector<3x64xf32> to vector<3x64xbf16>
    %cst_31 = arith.constant dense<0.000000e+00> : vector<3x64xf32>
    %39 = tpu.matmul %38, %36, %cst_31 {dimension_numbers = #tpu.dot_dimension_numbers<[1], [0], [0], [1], [0, 0, 1, 1], [], []>} : vector<3x64xbf16>, vector<64x64xbf16>, vector<3x64xf32> -> vector<3x64xf32>
    %40 = arith.addf %26, %39 : vector<3x64xf32>
    %c9 = arith.constant 9 : index
    %c0_32 = arith.constant 0 : index
    %41 = vector.load %arg9[%c9, %c0_32] : memref<64x64xf32, #tpu.memory_space<vmem>>, vector<3x64xf32>
    %42 = arith.truncf %41 : vector<3x64xf32> to vector<3x64xbf16>
    %cst_33 = arith.constant dense<0.000000e+00> : vector<3x64xf32>
    %43 = tpu.matmul %42, %36, %cst_33 {dimension_numbers = #tpu.dot_dimension_numbers<[1], [0], [0], [1], [0, 0, 1, 1], [], []>} : vector<3x64xbf16>, vector<64x64xbf16>, vector<3x64xf32> -> vector<3x64xf32>
    %44 = arith.addf %30, %43 : vector<3x64xf32>
    %c17 = arith.constant 17 : index
    %c0_34 = arith.constant 0 : index
    %45 = vector.load %arg9[%c17, %c0_34] : memref<64x64xf32, #tpu.memory_space<vmem>>, vector<3x64xf32>
    %46 = arith.truncf %45 : vector<3x64xf32> to vector<3x64xbf16>
    %cst_35 = arith.constant dense<0.000000e+00> : vector<3x64xf32>
    %47 = tpu.matmul %46, %36, %cst_35 {dimension_numbers = #tpu.dot_dimension_numbers<[1], [0], [0], [1], [0, 0, 1, 1], [], []>} : vector<3x64xbf16>, vector<64x64xbf16>, vector<3x64xf32> -> vector<3x64xf32>
    %48 = arith.addf %34, %47 : vector<3x64xf32>
    %c3 = arith.constant 3 : index
    %c0_36 = arith.constant 0 : index
    %c0_37 = arith.constant 0 : index
    %49 = vector.load %arg4[%c3, %c0_36, %c0_37] : memref<9x64x64xbf16, #tpu.memory_space<vmem>>, vector<1x64x64xbf16>
    %50 = vector.shape_cast %49 : vector<1x64x64xbf16> to vector<64x64xbf16>
    %c32 = arith.constant 32 : index
    %c0_38 = arith.constant 0 : index
    %51 = vector.load %arg9[%c32, %c0_38] : memref<64x64xf32, #tpu.memory_space<vmem>>, vector<3x64xf32>
    %52 = arith.truncf %51 : vector<3x64xf32> to vector<3x64xbf16>
    %cst_39 = arith.constant dense<0.000000e+00> : vector<3x64xf32>
    %53 = tpu.matmul %52, %50, %cst_39 {dimension_numbers = #tpu.dot_dimension_numbers<[1], [0], [0], [1], [0, 0, 1, 1], [], []>} : vector<3x64xbf16>, vector<64x64xbf16>, vector<3x64xf32> -> vector<3x64xf32>
    %54 = arith.addf %40, %53 : vector<3x64xf32>
    %c40 = arith.constant 40 : index
    %c0_40 = arith.constant 0 : index
    %55 = vector.load %arg9[%c40, %c0_40] : memref<64x64xf32, #tpu.memory_space<vmem>>, vector<3x64xf32>
    %56 = arith.truncf %55 : vector<3x64xf32> to vector<3x64xbf16>
    %cst_41 = arith.constant dense<0.000000e+00> : vector<3x64xf32>
    %57 = tpu.matmul %56, %50, %cst_41 {dimension_numbers = #tpu.dot_dimension_numbers<[1], [0], [0], [1], [0, 0, 1, 1], [], []>} : vector<3x64xbf16>, vector<64x64xbf16>, vector<3x64xf32> -> vector<3x64xf32>
    %58 = arith.addf %44, %57 : vector<3x64xf32>
    %c48 = arith.constant 48 : index
    %c0_42 = arith.constant 0 : index
    %59 = vector.load %arg9[%c48, %c0_42] : memref<64x64xf32, #tpu.memory_space<vmem>>, vector<3x64xf32>
    %60 = arith.truncf %59 : vector<3x64xf32> to vector<3x64xbf16>
    %cst_43 = arith.constant dense<0.000000e+00> : vector<3x64xf32>
    %61 = tpu.matmul %60, %50, %cst_43 {dimension_numbers = #tpu.dot_dimension_numbers<[1], [0], [0], [1], [0, 0, 1, 1], [], []>} : vector<3x64xbf16>, vector<64x64xbf16>, vector<3x64xf32> -> vector<3x64xf32>
    %62 = arith.addf %48, %61 : vector<3x64xf32>
    %c4_44 = arith.constant 4 : index
    %c0_45 = arith.constant 0 : index
    %c0_46 = arith.constant 0 : index
    %63 = vector.load %arg4[%c4_44, %c0_45, %c0_46] : memref<9x64x64xbf16, #tpu.memory_space<vmem>>, vector<1x64x64xbf16>
    %64 = vector.shape_cast %63 : vector<1x64x64xbf16> to vector<64x64xbf16>
    %c36 = arith.constant 36 : index
    %c0_47 = arith.constant 0 : index
    %65 = vector.load %arg9[%c36, %c0_47] : memref<64x64xf32, #tpu.memory_space<vmem>>, vector<3x64xf32>
    %66 = arith.truncf %65 : vector<3x64xf32> to vector<3x64xbf16>
    %cst_48 = arith.constant dense<0.000000e+00> : vector<3x64xf32>
    %67 = tpu.matmul %66, %64, %cst_48 {dimension_numbers = #tpu.dot_dimension_numbers<[1], [0], [0], [1], [0, 0, 1, 1], [], []>} : vector<3x64xbf16>, vector<64x64xbf16>, vector<3x64xf32> -> vector<3x64xf32>
    %68 = arith.addf %54, %67 : vector<3x64xf32>
    %c44 = arith.constant 44 : index
    %c0_49 = arith.constant 0 : index
    %69 = vector.load %arg9[%c44, %c0_49] : memref<64x64xf32, #tpu.memory_space<vmem>>, vector<3x64xf32>
    %70 = arith.truncf %69 : vector<3x64xf32> to vector<3x64xbf16>
    %cst_50 = arith.constant dense<0.000000e+00> : vector<3x64xf32>
    %71 = tpu.matmul %70, %64, %cst_50 {dimension_numbers = #tpu.dot_dimension_numbers<[1], [0], [0], [1], [0, 0, 1, 1], [], []>} : vector<3x64xbf16>, vector<64x64xbf16>, vector<3x64xf32> -> vector<3x64xf32>
    %72 = arith.addf %58, %71 : vector<3x64xf32>
    %c52 = arith.constant 52 : index
    %c0_51 = arith.constant 0 : index
    %73 = vector.load %arg9[%c52, %c0_51] : memref<64x64xf32, #tpu.memory_space<vmem>>, vector<3x64xf32>
    %74 = arith.truncf %73 : vector<3x64xf32> to vector<3x64xbf16>
    %cst_52 = arith.constant dense<0.000000e+00> : vector<3x64xf32>
    %75 = tpu.matmul %74, %64, %cst_52 {dimension_numbers = #tpu.dot_dimension_numbers<[1], [0], [0], [1], [0, 0, 1, 1], [], []>} : vector<3x64xbf16>, vector<64x64xbf16>, vector<3x64xf32> -> vector<3x64xf32>
    %76 = arith.addf %62, %75 : vector<3x64xf32>
    %c5 = arith.constant 5 : index
    %c0_53 = arith.constant 0 : index
    %c0_54 = arith.constant 0 : index
    %77 = vector.load %arg4[%c5, %c0_53, %c0_54] : memref<9x64x64xbf16, #tpu.memory_space<vmem>>, vector<1x64x64xbf16>
    %78 = vector.shape_cast %77 : vector<1x64x64xbf16> to vector<64x64xbf16>
    %c33 = arith.constant 33 : index
    %c0_55 = arith.constant 0 : index
    %79 = vector.load %arg9[%c33, %c0_55] : memref<64x64xf32, #tpu.memory_space<vmem>>, vector<3x64xf32>
    %80 = arith.truncf %79 : vector<3x64xf32> to vector<3x64xbf16>
    %cst_56 = arith.constant dense<0.000000e+00> : vector<3x64xf32>
    %81 = tpu.matmul %80, %78, %cst_56 {dimension_numbers = #tpu.dot_dimension_numbers<[1], [0], [0], [1], [0, 0, 1, 1], [], []>} : vector<3x64xbf16>, vector<64x64xbf16>, vector<3x64xf32> -> vector<3x64xf32>
    %82 = arith.addf %68, %81 : vector<3x64xf32>
    %c41 = arith.constant 41 : index
    %c0_57 = arith.constant 0 : index
    %83 = vector.load %arg9[%c41, %c0_57] : memref<64x64xf32, #tpu.memory_space<vmem>>, vector<3x64xf32>
    %84 = arith.truncf %83 : vector<3x64xf32> to vector<3x64xbf16>
    %cst_58 = arith.constant dense<0.000000e+00> : vector<3x64xf32>
    %85 = tpu.matmul %84, %78, %cst_58 {dimension_numbers = #tpu.dot_dimension_numbers<[1], [0], [0], [1], [0, 0, 1, 1], [], []>} : vector<3x64xbf16>, vector<64x64xbf16>, vector<3x64xf32> -> vector<3x64xf32>
    %86 = arith.addf %72, %85 : vector<3x64xf32>
    %c49 = arith.constant 49 : index
    %c0_59 = arith.constant 0 : index
    %87 = vector.load %arg9[%c49, %c0_59] : memref<64x64xf32, #tpu.memory_space<vmem>>, vector<3x64xf32>
    %88 = arith.truncf %87 : vector<3x64xf32> to vector<3x64xbf16>
    %cst_60 = arith.constant dense<0.000000e+00> : vector<3x64xf32>
    %89 = tpu.matmul %88, %78, %cst_60 {dimension_numbers = #tpu.dot_dimension_numbers<[1], [0], [0], [1], [0, 0, 1, 1], [], []>} : vector<3x64xbf16>, vector<64x64xbf16>, vector<3x64xf32> -> vector<3x64xf32>
    %90 = arith.addf %76, %89 : vector<3x64xf32>
    %c6 = arith.constant 6 : index
    %c0_61 = arith.constant 0 : index
    %c0_62 = arith.constant 0 : index
    %91 = vector.load %arg4[%c6, %c0_61, %c0_62] : memref<9x64x64xbf16, #tpu.memory_space<vmem>>, vector<1x64x64xbf16>
    %92 = vector.shape_cast %91 : vector<1x64x64xbf16> to vector<64x64xbf16>
    %c8_63 = arith.constant 8 : index
    %c0_64 = arith.constant 0 : index
    %93 = vector.load %arg9[%c8_63, %c0_64] : memref<64x64xf32, #tpu.memory_space<vmem>>, vector<3x64xf32>
    %94 = arith.truncf %93 : vector<3x64xf32> to vector<3x64xbf16>
    %cst_65 = arith.constant dense<0.000000e+00> : vector<3x64xf32>
    %95 = tpu.matmul %94, %92, %cst_65 {dimension_numbers = #tpu.dot_dimension_numbers<[1], [0], [0], [1], [0, 0, 1, 1], [], []>} : vector<3x64xbf16>, vector<64x64xbf16>, vector<3x64xf32> -> vector<3x64xf32>
    %96 = arith.addf %82, %95 : vector<3x64xf32>
    %c16_66 = arith.constant 16 : index
    %c0_67 = arith.constant 0 : index
    %97 = vector.load %arg9[%c16_66, %c0_67] : memref<64x64xf32, #tpu.memory_space<vmem>>, vector<3x64xf32>
    %98 = arith.truncf %97 : vector<3x64xf32> to vector<3x64xbf16>
    %cst_68 = arith.constant dense<0.000000e+00> : vector<3x64xf32>
    %99 = tpu.matmul %98, %92, %cst_68 {dimension_numbers = #tpu.dot_dimension_numbers<[1], [0], [0], [1], [0, 0, 1, 1], [], []>} : vector<3x64xbf16>, vector<64x64xbf16>, vector<3x64xf32> -> vector<3x64xf32>
    %100 = arith.addf %86, %99 : vector<3x64xf32>
    %c24 = arith.constant 24 : index
    %c0_69 = arith.constant 0 : index
    %101 = vector.load %arg9[%c24, %c0_69] : memref<64x64xf32, #tpu.memory_space<vmem>>, vector<3x64xf32>
    %102 = arith.truncf %101 : vector<3x64xf32> to vector<3x64xbf16>
    %cst_70 = arith.constant dense<0.000000e+00> : vector<3x64xf32>
    %103 = tpu.matmul %102, %92, %cst_70 {dimension_numbers = #tpu.dot_dimension_numbers<[1], [0], [0], [1], [0, 0, 1, 1], [], []>} : vector<3x64xbf16>, vector<64x64xbf16>, vector<3x64xf32> -> vector<3x64xf32>
    %104 = arith.addf %90, %103 : vector<3x64xf32>
    %c7 = arith.constant 7 : index
    %c0_71 = arith.constant 0 : index
    %c0_72 = arith.constant 0 : index
    %105 = vector.load %arg4[%c7, %c0_71, %c0_72] : memref<9x64x64xbf16, #tpu.memory_space<vmem>>, vector<1x64x64xbf16>
    %106 = vector.shape_cast %105 : vector<1x64x64xbf16> to vector<64x64xbf16>
    %c12_73 = arith.constant 12 : index
    %c0_74 = arith.constant 0 : index
    %107 = vector.load %arg9[%c12_73, %c0_74] : memref<64x64xf32, #tpu.memory_space<vmem>>, vector<3x64xf32>
    %108 = arith.truncf %107 : vector<3x64xf32> to vector<3x64xbf16>
    %cst_75 = arith.constant dense<0.000000e+00> : vector<3x64xf32>
    %109 = tpu.matmul %108, %106, %cst_75 {dimension_numbers = #tpu.dot_dimension_numbers<[1], [0], [0], [1], [0, 0, 1, 1], [], []>} : vector<3x64xbf16>, vector<64x64xbf16>, vector<3x64xf32> -> vector<3x64xf32>
    %110 = arith.addf %96, %109 : vector<3x64xf32>
    %c20_76 = arith.constant 20 : index
    %c0_77 = arith.constant 0 : index
    %111 = vector.load %arg9[%c20_76, %c0_77] : memref<64x64xf32, #tpu.memory_space<vmem>>, vector<3x64xf32>
    %112 = arith.truncf %111 : vector<3x64xf32> to vector<3x64xbf16>
    %cst_78 = arith.constant dense<0.000000e+00> : vector<3x64xf32>
    %113 = tpu.matmul %112, %106, %cst_78 {dimension_numbers = #tpu.dot_dimension_numbers<[1], [0], [0], [1], [0, 0, 1, 1], [], []>} : vector<3x64xbf16>, vector<64x64xbf16>, vector<3x64xf32> -> vector<3x64xf32>
    %114 = arith.addf %100, %113 : vector<3x64xf32>
    %c28 = arith.constant 28 : index
    %c0_79 = arith.constant 0 : index
    %115 = vector.load %arg9[%c28, %c0_79] : memref<64x64xf32, #tpu.memory_space<vmem>>, vector<3x64xf32>
    %116 = arith.truncf %115 : vector<3x64xf32> to vector<3x64xbf16>
    %cst_80 = arith.constant dense<0.000000e+00> : vector<3x64xf32>
    %117 = tpu.matmul %116, %106, %cst_80 {dimension_numbers = #tpu.dot_dimension_numbers<[1], [0], [0], [1], [0, 0, 1, 1], [], []>} : vector<3x64xbf16>, vector<64x64xbf16>, vector<3x64xf32> -> vector<3x64xf32>
    %118 = arith.addf %104, %117 : vector<3x64xf32>
    %c8_81 = arith.constant 8 : index
    %c0_82 = arith.constant 0 : index
    %c0_83 = arith.constant 0 : index
    %119 = vector.load %arg4[%c8_81, %c0_82, %c0_83] : memref<9x64x64xbf16, #tpu.memory_space<vmem>>, vector<1x64x64xbf16>
    %120 = vector.shape_cast %119 : vector<1x64x64xbf16> to vector<64x64xbf16>
    %c9_84 = arith.constant 9 : index
    %c0_85 = arith.constant 0 : index
    %121 = vector.load %arg9[%c9_84, %c0_85] : memref<64x64xf32, #tpu.memory_space<vmem>>, vector<3x64xf32>
    %122 = arith.truncf %121 : vector<3x64xf32> to vector<3x64xbf16>
    %cst_86 = arith.constant dense<0.000000e+00> : vector<3x64xf32>
    %123 = tpu.matmul %122, %120, %cst_86 {dimension_numbers = #tpu.dot_dimension_numbers<[1], [0], [0], [1], [0, 0, 1, 1], [], []>} : vector<3x64xbf16>, vector<64x64xbf16>, vector<3x64xf32> -> vector<3x64xf32>
    %124 = arith.addf %110, %123 : vector<3x64xf32>
    %c17_87 = arith.constant 17 : index
    %c0_88 = arith.constant 0 : index
    %125 = vector.load %arg9[%c17_87, %c0_88] : memref<64x64xf32, #tpu.memory_space<vmem>>, vector<3x64xf32>
    %126 = arith.truncf %125 : vector<3x64xf32> to vector<3x64xbf16>
    %cst_89 = arith.constant dense<0.000000e+00> : vector<3x64xf32>
    %127 = tpu.matmul %126, %120, %cst_89 {dimension_numbers = #tpu.dot_dimension_numbers<[1], [0], [0], [1], [0, 0, 1, 1], [], []>} : vector<3x64xbf16>, vector<64x64xbf16>, vector<3x64xf32> -> vector<3x64xf32>
    %128 = arith.addf %114, %127 : vector<3x64xf32>
    %c25 = arith.constant 25 : index
    %c0_90 = arith.constant 0 : index
    %129 = vector.load %arg9[%c25, %c0_90] : memref<64x64xf32, #tpu.memory_space<vmem>>, vector<3x64xf32>
    %130 = arith.truncf %129 : vector<3x64xf32> to vector<3x64xbf16>
    %cst_91 = arith.constant dense<0.000000e+00> : vector<3x64xf32>
    %131 = tpu.matmul %130, %120, %cst_91 {dimension_numbers = #tpu.dot_dimension_numbers<[1], [0], [0], [1], [0, 0, 1, 1], [], []>} : vector<3x64xbf16>, vector<64x64xbf16>, vector<3x64xf32> -> vector<3x64xf32>
    %132 = arith.addf %118, %131 : vector<3x64xf32>
    %c0_92 = arith.constant 0 : index
    %c0_93 = arith.constant 0 : index
    %133 = vector.load %arg5[%c0_92, %c0_93] : memref<1x64xf32, #tpu.memory_space<vmem>>, vector<1x64xf32>
    %134 = vector.broadcast %133 : vector<1x64xf32> to vector<3x64xf32>
    %135 = arith.addf %124, %134 : vector<3x64xf32>
    %cst_94 = arith.constant 0.000000e+00 : f32
    %136 = vector.broadcast %cst_94 : f32 to vector<3x64xf32>
    %137 = arith.maximumf %135, %136 : vector<3x64xf32>
    %138 = vector.extract_strided_slice %137 {offsets = [0, 0], sizes = [1, 64], strides = [1, 1]} : vector<3x64xf32> to vector<1x64xf32>
    %139 = arith.truncf %138 : vector<1x64xf32> to vector<1x64xbf16>
    %c0_95 = arith.constant 0 : index
    %c0_96 = arith.constant 0 : index
    %c0_97 = arith.constant 0 : index
    %140 = vector.load %arg6[%c0_95, %c0_96, %c0_97] : memref<9x64x128xbf16, #tpu.memory_space<vmem>>, vector<1x64x128xbf16>
    %141 = vector.shape_cast %140 : vector<1x64x128xbf16> to vector<64x128xbf16>
    %cst_98 = arith.constant dense<0.000000e+00> : vector<1x128xf32>
    %142 = tpu.matmul %139, %141, %cst_98 {dimension_numbers = #tpu.dot_dimension_numbers<[1], [0], [0], [1], [0, 0, 1, 1], [], []>} : vector<1x64xbf16>, vector<64x128xbf16>, vector<1x128xf32> -> vector<1x128xf32>
    %143 = vector.extract_strided_slice %137 {offsets = [1, 0], sizes = [1, 64], strides = [1, 1]} : vector<3x64xf32> to vector<1x64xf32>
    %144 = arith.truncf %143 : vector<1x64xf32> to vector<1x64xbf16>
    %c1_99 = arith.constant 1 : index
    %c0_100 = arith.constant 0 : index
    %c0_101 = arith.constant 0 : index
    %145 = vector.load %arg6[%c1_99, %c0_100, %c0_101] : memref<9x64x128xbf16, #tpu.memory_space<vmem>>, vector<1x64x128xbf16>
    %146 = vector.shape_cast %145 : vector<1x64x128xbf16> to vector<64x128xbf16>
    %cst_102 = arith.constant dense<0.000000e+00> : vector<1x128xf32>
    %147 = tpu.matmul %144, %146, %cst_102 {dimension_numbers = #tpu.dot_dimension_numbers<[1], [0], [0], [1], [0, 0, 1, 1], [], []>} : vector<1x64xbf16>, vector<64x128xbf16>, vector<1x128xf32> -> vector<1x128xf32>
    %148 = arith.addf %142, %147 : vector<1x128xf32>
    %149 = vector.extract_strided_slice %137 {offsets = [2, 0], sizes = [1, 64], strides = [1, 1]} : vector<3x64xf32> to vector<1x64xf32>
    %150 = arith.truncf %149 : vector<1x64xf32> to vector<1x64xbf16>
    %c2_103 = arith.constant 2 : index
    %c0_104 = arith.constant 0 : index
    %c0_105 = arith.constant 0 : index
    %151 = vector.load %arg6[%c2_103, %c0_104, %c0_105] : memref<9x64x128xbf16, #tpu.memory_space<vmem>>, vector<1x64x128xbf16>
    %152 = vector.shape_cast %151 : vector<1x64x128xbf16> to vector<64x128xbf16>
    %cst_106 = arith.constant dense<0.000000e+00> : vector<1x128xf32>
    %153 = tpu.matmul %150, %152, %cst_106 {dimension_numbers = #tpu.dot_dimension_numbers<[1], [0], [0], [1], [0, 0, 1, 1], [], []>} : vector<1x64xbf16>, vector<64x128xbf16>, vector<1x128xf32> -> vector<1x128xf32>
    %154 = arith.addf %148, %153 : vector<1x128xf32>
    %c0_107 = arith.constant 0 : index
    %c0_108 = arith.constant 0 : index
    %155 = vector.load %arg5[%c0_107, %c0_108] : memref<1x64xf32, #tpu.memory_space<vmem>>, vector<1x64xf32>
    %156 = vector.broadcast %155 : vector<1x64xf32> to vector<3x64xf32>
    %157 = arith.addf %128, %156 : vector<3x64xf32>
    %cst_109 = arith.constant 0.000000e+00 : f32
    %158 = vector.broadcast %cst_109 : f32 to vector<3x64xf32>
    %159 = arith.maximumf %157, %158 : vector<3x64xf32>
    %160 = vector.extract_strided_slice %159 {offsets = [0, 0], sizes = [1, 64], strides = [1, 1]} : vector<3x64xf32> to vector<1x64xf32>
    %161 = arith.truncf %160 : vector<1x64xf32> to vector<1x64xbf16>
    %c3_110 = arith.constant 3 : index
    %c0_111 = arith.constant 0 : index
    %c0_112 = arith.constant 0 : index
    %162 = vector.load %arg6[%c3_110, %c0_111, %c0_112] : memref<9x64x128xbf16, #tpu.memory_space<vmem>>, vector<1x64x128xbf16>
    %163 = vector.shape_cast %162 : vector<1x64x128xbf16> to vector<64x128xbf16>
    %cst_113 = arith.constant dense<0.000000e+00> : vector<1x128xf32>
    %164 = tpu.matmul %161, %163, %cst_113 {dimension_numbers = #tpu.dot_dimension_numbers<[1], [0], [0], [1], [0, 0, 1, 1], [], []>} : vector<1x64xbf16>, vector<64x128xbf16>, vector<1x128xf32> -> vector<1x128xf32>
    %165 = arith.addf %154, %164 : vector<1x128xf32>
    %166 = vector.extract_strided_slice %159 {offsets = [1, 0], sizes = [1, 64], strides = [1, 1]} : vector<3x64xf32> to vector<1x64xf32>
    %167 = arith.truncf %166 : vector<1x64xf32> to vector<1x64xbf16>
    %c4_114 = arith.constant 4 : index
    %c0_115 = arith.constant 0 : index
    %c0_116 = arith.constant 0 : index
    %168 = vector.load %arg6[%c4_114, %c0_115, %c0_116] : memref<9x64x128xbf16, #tpu.memory_space<vmem>>, vector<1x64x128xbf16>
    %169 = vector.shape_cast %168 : vector<1x64x128xbf16> to vector<64x128xbf16>
    %cst_117 = arith.constant dense<0.000000e+00> : vector<1x128xf32>
    %170 = tpu.matmul %167, %169, %cst_117 {dimension_numbers = #tpu.dot_dimension_numbers<[1], [0], [0], [1], [0, 0, 1, 1], [], []>} : vector<1x64xbf16>, vector<64x128xbf16>, vector<1x128xf32> -> vector<1x128xf32>
    %171 = arith.addf %165, %170 : vector<1x128xf32>
    %172 = vector.extract_strided_slice %159 {offsets = [2, 0], sizes = [1, 64], strides = [1, 1]} : vector<3x64xf32> to vector<1x64xf32>
    %173 = arith.truncf %172 : vector<1x64xf32> to vector<1x64xbf16>
    %c5_118 = arith.constant 5 : index
    %c0_119 = arith.constant 0 : index
    %c0_120 = arith.constant 0 : index
    %174 = vector.load %arg6[%c5_118, %c0_119, %c0_120] : memref<9x64x128xbf16, #tpu.memory_space<vmem>>, vector<1x64x128xbf16>
    %175 = vector.shape_cast %174 : vector<1x64x128xbf16> to vector<64x128xbf16>
    %cst_121 = arith.constant dense<0.000000e+00> : vector<1x128xf32>
    %176 = tpu.matmul %173, %175, %cst_121 {dimension_numbers = #tpu.dot_dimension_numbers<[1], [0], [0], [1], [0, 0, 1, 1], [], []>} : vector<1x64xbf16>, vector<64x128xbf16>, vector<1x128xf32> -> vector<1x128xf32>
    %177 = arith.addf %171, %176 : vector<1x128xf32>
    %c0_122 = arith.constant 0 : index
    %c0_123 = arith.constant 0 : index
    %178 = vector.load %arg5[%c0_122, %c0_123] : memref<1x64xf32, #tpu.memory_space<vmem>>, vector<1x64xf32>
    %179 = vector.broadcast %178 : vector<1x64xf32> to vector<3x64xf32>
    %180 = arith.addf %132, %179 : vector<3x64xf32>
    %cst_124 = arith.constant 0.000000e+00 : f32
    %181 = vector.broadcast %cst_124 : f32 to vector<3x64xf32>
    %182 = arith.maximumf %180, %181 : vector<3x64xf32>
    %183 = vector.extract_strided_slice %182 {offsets = [0, 0], sizes = [1, 64], strides = [1, 1]} : vector<3x64xf32> to vector<1x64xf32>
    %184 = arith.truncf %183 : vector<1x64xf32> to vector<1x64xbf16>
    %c6_125 = arith.constant 6 : index
    %c0_126 = arith.constant 0 : index
    %c0_127 = arith.constant 0 : index
    %185 = vector.load %arg6[%c6_125, %c0_126, %c0_127] : memref<9x64x128xbf16, #tpu.memory_space<vmem>>, vector<1x64x128xbf16>
    %186 = vector.shape_cast %185 : vector<1x64x128xbf16> to vector<64x128xbf16>
    %cst_128 = arith.constant dense<0.000000e+00> : vector<1x128xf32>
    %187 = tpu.matmul %184, %186, %cst_128 {dimension_numbers = #tpu.dot_dimension_numbers<[1], [0], [0], [1], [0, 0, 1, 1], [], []>} : vector<1x64xbf16>, vector<64x128xbf16>, vector<1x128xf32> -> vector<1x128xf32>
    %188 = arith.addf %177, %187 : vector<1x128xf32>
    %189 = vector.extract_strided_slice %182 {offsets = [1, 0], sizes = [1, 64], strides = [1, 1]} : vector<3x64xf32> to vector<1x64xf32>
    %190 = arith.truncf %189 : vector<1x64xf32> to vector<1x64xbf16>
    %c7_129 = arith.constant 7 : index
    %c0_130 = arith.constant 0 : index
    %c0_131 = arith.constant 0 : index
    %191 = vector.load %arg6[%c7_129, %c0_130, %c0_131] : memref<9x64x128xbf16, #tpu.memory_space<vmem>>, vector<1x64x128xbf16>
    %192 = vector.shape_cast %191 : vector<1x64x128xbf16> to vector<64x128xbf16>
    %cst_132 = arith.constant dense<0.000000e+00> : vector<1x128xf32>
    %193 = tpu.matmul %190, %192, %cst_132 {dimension_numbers = #tpu.dot_dimension_numbers<[1], [0], [0], [1], [0, 0, 1, 1], [], []>} : vector<1x64xbf16>, vector<64x128xbf16>, vector<1x128xf32> -> vector<1x128xf32>
    %194 = arith.addf %188, %193 : vector<1x128xf32>
    %195 = vector.extract_strided_slice %182 {offsets = [2, 0], sizes = [1, 64], strides = [1, 1]} : vector<3x64xf32> to vector<1x64xf32>
    %196 = arith.truncf %195 : vector<1x64xf32> to vector<1x64xbf16>
    %c8_133 = arith.constant 8 : index
    %c0_134 = arith.constant 0 : index
    %c0_135 = arith.constant 0 : index
    %197 = vector.load %arg6[%c8_133, %c0_134, %c0_135] : memref<9x64x128xbf16, #tpu.memory_space<vmem>>, vector<1x64x128xbf16>
    %198 = vector.shape_cast %197 : vector<1x64x128xbf16> to vector<64x128xbf16>
    %cst_136 = arith.constant dense<0.000000e+00> : vector<1x128xf32>
    %199 = tpu.matmul %196, %198, %cst_136 {dimension_numbers = #tpu.dot_dimension_numbers<[1], [0], [0], [1], [0, 0, 1, 1], [], []>} : vector<1x64xbf16>, vector<64x128xbf16>, vector<1x128xf32> -> vector<1x128xf32>
    %200 = arith.addf %194, %199 : vector<1x128xf32>
    %c0_137 = arith.constant 0 : index
    %c0_138 = arith.constant 0 : index
    %201 = vector.load %arg7[%c0_137, %c0_138] : memref<1x128xf32, #tpu.memory_space<vmem>>, vector<1x128xf32>
    %202 = arith.addf %200, %201 : vector<1x128xf32>
    %c0_139 = arith.constant 0 : index
    %c0_140 = arith.constant 0 : index
    %c0_141 = arith.constant 0 : index
    %203 = vector.load %arg8[%c0_139, %c0_140, %c0_141] : memref<1x1x128xf32, #tpu.memory_space<vmem>>, vector<1x1x128xf32>
    %204 = vector.shape_cast %203 : vector<1x1x128xf32> to vector<1x128xf32>
    %205 = vector.shape_cast %202 : vector<1x128xf32> to vector<1x1x128xf32>
    tpu.vector_store %arg8[%c0_139, %c0_140, %c0_141], %205 {strides = array<i32>} : memref<1x1x128xf32, #tpu.memory_space<vmem>>, vector<1x1x128xf32>,
    return
  }
  func.func @transform_0(%arg0: i32) -> (i32, i32, i32) {
    %c0_i32 = arith.constant 0 : i32
    %c0_i32_0 = arith.constant 0 : i32
    %c0_i32_1 = arith.constant 0 : i32
    return %arg0, %c0_i32, %c0_i32_0 : i32, i32, i32
  }
  func.func @transform_1(%arg0: i32) -> (i32, i32) {
    %c0_i32 = arith.constant 0 : i32
    %c0_i32_0 = arith.constant 0 : i32
    %c0_i32_1 = arith.constant 0 : i32
    return %c0_i32, %c0_i32_0 : i32, i32
  }
  func.func @transform_2(%arg0: i32) -> (i32, i32) {
    %c0_i32 = arith.constant 0 : i32
    %c0_i32_0 = arith.constant 0 : i32
    %c0_i32_1 = arith.constant 0 : i32
    return %c0_i32, %c0_i32_0 : i32, i32
  }
  func.func @transform_3(%arg0: i32) -> (i32, i32, i32) {
    %c0_i32 = arith.constant 0 : i32
    %c0_i32_0 = arith.constant 0 : i32
    %c0_i32_1 = arith.constant 0 : i32
    %c0_i32_2 = arith.constant 0 : i32
    return %c0_i32, %c0_i32_0, %c0_i32_1 : i32, i32, i32
  }
  func.func @transform_4(%arg0: i32) -> (i32, i32) {
    %c0_i32 = arith.constant 0 : i32
    %c0_i32_0 = arith.constant 0 : i32
    %c0_i32_1 = arith.constant 0 : i32
    return %c0_i32, %c0_i32_0 : i32, i32
  }
  func.func @transform_5(%arg0: i32) -> (i32, i32, i32) {
    %c0_i32 = arith.constant 0 : i32
    %c0_i32_0 = arith.constant 0 : i32
    %c0_i32_1 = arith.constant 0 : i32
    %c0_i32_2 = arith.constant 0 : i32
    return %c0_i32, %c0_i32_0, %c0_i32_1 : i32, i32, i32
  }
  func.func @transform_6(%arg0: i32) -> (i32, i32) {
    %c0_i32 = arith.constant 0 : i32
    %c0_i32_0 = arith.constant 0 : i32
    %c0_i32_1 = arith.constant 0 : i32
    return %c0_i32, %c0_i32_0 : i32, i32
  }
  func.func @transform_7(%arg0: i32) -> (i32, i32, i32) {
    %c0_i32 = arith.constant 0 : i32
    %c0_i32_0 = arith.constant 0 : i32
    %c0_i32_1 = arith.constant 0 : i32
    return %arg0, %c0_i32, %c0_i32_0 : i32, i32, i32
  }
}

</mosaic_0001>

<bundles_post_ra>
// kernel: forward.1
= control target key start
LH: loop header
LB: loop body
LE: loop exit
PB: predicated region body
PF: predicated region fallthrough
CT: control target
= control target key end

     0   :  { %s3783_s24 = smov 0   ;;  %s4369_s0 = inlined_call_operand.vmem [shape: bf16[2,64,128], index: 0, kind: input, shape index: {}]   ;;  %s4370_s1 = inlined_call_operand.vmem [shape: bf16[128,64], index: 1, kind: input, shape index: {}]   ;;  %s4371_s2 = inlined_call_operand.vmem [shape: f32[1,64], index: 2, kind: input, shape index: {}]   ;;  %s4372_s3 = inlined_call_operand.vmem [shape: bf16[9,64,64], index: 3, kind: input, shape index: {}]   ;;  %s4373_s4 = inlined_call_operand.vmem [shape: f32[1,64], index: 4, kind: input, shape index: {}]   ;;  %s4374_s5 = inlined_call_operand.vmem [shape: bf16[9,64,128], index: 5, kind: input, shape index: {}]   ;;  %s4375_s6 = inlined_call_operand.vmem [shape: f32[1,128], index: 6, kind: input, shape index: {}]   ;;  %s4376_s7 = inlined_call_operand.vmem [shape: f32[2,1,128], index: 7, kind: output, shape index: {}]  }
   0x1 LB: > { %s2731_s25 = sadd.s32 4294967295, %s3739_s24   ;;  %p2735_p0 = scmp.ge.s32.totalorder %s3739_s24, 1  ;;  %s3739_s24 = sphi %s3783_s24, %s17_s24  }
   0x2   : > { %p237_p1 = scmp.lt.s32.totalorder %s3739_s24, 3 }
   0x4   : > { %p238_p2 = pnand %p2735_p0, %p237_p1 }
   0x5   : > { %v3649_v0 = vld [vmem:[%s4370_s1] sm:$0xff] (!%p238_p2)   ;;  %p267_p3 = scmp.lt.s32.totalorder (!%p238_p2), %s2731_s25, 1  ;;  %v3650_v1 = vld [vmem:[%s4370_s1 + $0x8] sm:$0xff] (!%p238_p2)   ;;  %v3741_v2 = vmov (!%p238_p2), 0.0   ;;  %v3651_v3 = vld [vmem:[%s4370_s1 + $0x10] sm:$0xff] (!%p238_p2)   ;;  %vm3742_vm0 = vmmov (!%p238_p2), 0  }
   0x6   : > { %241 = sbr.rel (%p238_p2) target bundleno = 946 (0x3b2), region = 48  ;;  %3183 = vmatprep.subr.bf16.mxu0 (!%p238_p2), %v3649_v0  ;;  %3207 = vmatprep.subr.bf16.mxu1 (!%p238_p2), %v3741_v2  ;;  %v3652_v4 = vld [vmem:[%s4370_s1 + $0x18] sm:$0xff] (!%p238_p2)   ;;  %v3653_v6 = vld [vmem:[%s4370_s1 + $0x20] sm:$0xff] (!%p238_p2)   ;;  %v3654_v7 = vld [vmem:[%s4370_s1 + $0x28] sm:$0xff] (!%p238_p2)   ;;  %vm452_vm1 = vcmask (!%p238_p2), 523264  }
   0x7   : > { %3184 = vmatpush3.bf16.msra.mxu0 (!%p238_p2), %v3649_v0  ;;  %v3655_v8 = vld [vmem:[%s4370_s1 + $0x30] sm:$0xff] (!%p238_p2)   ;;  %v3656_v9 = vld [vmem:[%s4370_s1 + $0x38] sm:$0xff] (!%p238_p2)   ;;  %v3826_v13 = vld [vmem:[%s4372_s3 + $0x20] sm:$0xff] (!%p238_p2)   ;;  %3215 = vmatprep.mubr.msk.bf16.mxu1 (!%p238_p2), %vm3742_vm0, %v3741_v2 }
   0x8   : > { %3185 = vmatprep.subr.bf16.mxu0 (!%p238_p2), %v3650_v1  ;;  %3208 = vmatpush3.bf16.msra.mxu1 (!%p238_p2), %v3826_v13  ;;  %v3835_v14 = vld [vmem:[%s4372_s3 + $0x28] sm:$0xff] (!%p238_p2)   ;;  %v3844_v15 = vld [vmem:[%s4372_s3 + $0x30] sm:$0xff] (!%p238_p2)   ;;  %v3851_v16 = vld [vmem:[%s4372_s3 + $0x38] sm:$0xff] (!%p238_p2)  }
   0x9   : > { %3209 = vmatprep.subr.bf16.mxu1 (!%p238_p2), %v3741_v2  ;;  %v2738_v17 = vld [vmem:[%s4371_s2] ss:$0 sm:$0xff] (!%p238_p2)  ;;  %v3666_v45 = vld [vmem:[%s4372_s3 + $0x8] sm:$0xff] (!%p238_p2)   ;;  %v3667_v46 = vld [vmem:[%s4372_s3 + $0x10] sm:$0xff] (!%p238_p2)  }
   0xa   : > { %v3873_v40 = vld [vmem:[%s4372_s3] sm:$0xff] (!%p238_p2)   ;;  %v3668_v47 = vld [vmem:[%s4372_s3 + $0x18] sm:$0xff] (!%p238_p2)   ;;  %v3670_v53 = vld [vmem:[%s4372_s3 + $0x48] sm:$0xff] (!%p238_p2)  }
   0xb   : > { %3186 = vmatpush3.bf16.msra.mxu0 (!%p238_p2), %v3650_v1  ;;  %v3669_v51 = vld [vmem:[%s4372_s3 + $0x40] sm:$0xff] (!%p238_p2)   ;;  %v3671_v54 = vld [vmem:[%s4372_s3 + $0x50] sm:$0xff] (!%p238_p2)   ;;  %v3672_v55 = vld [vmem:[%s4372_s3 + $0x58] sm:$0xff] (!%p238_p2)  }
   0xc   : > { %3187 = vmatprep.subr.bf16.mxu0 (!%p238_p2), %v3651_v3  ;;  %3210 = vmatpush3.bf16.msra.mxu1 (!%p238_p2), %v3835_v14  ;;  %v3673_v63 = vld [vmem:[%s4372_s3 + $0x60] sm:$0xff] (!%p238_p2)   ;;  %v3674_v1 = vld [vmem:[%s4372_s3 + $0x68] sm:$0xff] (!%p238_p2)  }
   0xd   : > { %s4378_s25 = smov (!%p267_p3, %s2731_s25), 1  ;;  %3211 = vmatprep.subr.bf16.mxu1 %v3741_v2 }
   0xe   : > { %s2990_s9 = sshll.u32 %s4378_s25, 5  ;;  %s274_s30 = scalar_lea.vmem %s4376_s7, %s4378_s25 }
   0xf   : > { %s271_s12 = scalar_lea.vmem %s4369_s0, %s2990_s9  ;;  %3188 = vmatpush3.bf16.msra.mxu0 %v3651_v3  ;;  %v3675_v3 = vld [vmem:[%s4372_s3 + $0x70] sm:$0xff]  }
  0x10   : > { %v3657_v5 = vld [vmem:[%s271_s12] sm:$0xff]   ;;  %3189 = vmatprep.subr.bf16.mxu0 %v3652_v4  ;;  %v3658_v10 = vld [vmem:[%s271_s12 + $0x8] sm:$0xff]   ;;  %v3659_v11 = vld [vmem:[%s271_s12 + $0x10] sm:$0xff]   ;;  %3212 = vmatpush3.bf16.msra.mxu1 %v3844_v15 }
  0x11   : > { %3199 = vmatprep.mubr.bf16.mxu0 %v3657_v5  ;;  %v3660_v12 = vld [vmem:[%s271_s12 + $0x18] sm:$0xff]   ;;  %3213 = vmatprep.subr.bf16.mxu1 %v3741_v2 }
  0x13   : > { %3190 = vmatpush3.bf16.msra.mxu0 %v3652_v4  ;;  %v3676_v4 = vld [vmem:[%s4372_s3 + $0x78] sm:$0xff]  }
  0x14   : > { %3191 = vmatprep.subr.bf16.mxu0 %v3653_v6  ;;  %3214 = vmatpush3.bf16.msra.mxu1 %v3851_v16 }
  0x15   : > { %3219 = vmatprep.subr.bf16.mxu1 %v3741_v2 }
  0x17   : > { %3192 = vmatpush3.bf16.msra.mxu0 %v3653_v6 }
  0x18   : > { %3193 = vmatprep.subr.bf16.mxu0 %v3654_v7 }
  0x1b   : > { %3194 = vmatpush3.bf16.msra.mxu0 %v3654_v7 }
  0x1c   : > { %3195 = vmatprep.subr.bf16.mxu0 %v3655_v8 }
  0x1f   : > { %3196 = vmatpush3.bf16.msra.mxu0 %v3655_v8  ;;  %v3677_v8 = vld [vmem:[%s4372_s3 + $0x80] sm:$0xff]  }
  0x20   : > { %3197 = vmatprep.subr.bf16.mxu0 %v3656_v9 }
  0x23   : > { %3198 = vmatpush3.bf16.msra.mxu0 %v3656_v9 }
  0x24   : > { %3231 = vmatprep.subr.bf16.mxu0 %v3741_v2 }
  0x26   : > { %3200 = vmatmul.mubr.bf16.vlgmr.msra.gmra.mrb[0].mxu0 %v3658_v10  ;;  %v3678_v10 = vld [vmem:[%s4372_s3 + $0x88] sm:$0xff]  }
  0x27   : > { %3203 = vmatprep.mubr.bf16.mxu0 %v3659_v11  ;;  %3232 = vmatpush3.bf16.msra.mxu0 %v3826_v13  ;;  %v3679_v11 = vld [vmem:[%s4372_s3 + $0x90] sm:$0xff]  }
  0x28   : > { %3233 = vmatprep.subr.bf16.mxu0 %v3741_v2 }
  0x2b   : > { %3234 = vmatpush3.bf16.msra.mxu0 %v3835_v14 }
  0x2c   : > { %3235 = vmatprep.subr.bf16.mxu0 %v3741_v2 }
  0x2e   : > { %3204 = vmatmul.mubr.bf16.gmra.mrb[4].mxu0 %v3660_v12  ;;  %v3680_v12 = vld [vmem:[%s4372_s3 + $0x98] sm:$0xff]  }
  0x2f   : > { %3236 = vmatpush3.bf16.msra.mxu0 %v3844_v15  ;;  %3239 = vmatprep.mubr.msk.bf16.mxu0 %vm3742_vm0, %v3741_v2 }
  0x30   : > { %3237 = vmatprep.subr.bf16.mxu0 %v3741_v2 }
  0x33   : > { %3238 = vmatpush3.bf16.msra.mxu0 %v3851_v16 }
  0x34   : > { %3255 = vmatprep.subr.bf16.mxu0 %v3741_v2 }
  0xf9   : > { %v3201_v18 = vpop.f32.mrb[0].mxu0 }
  0xfa   : > { %v422_v19 = vadd.f32 %v3201_v18, %v2738_v17  ;;  %v413_v20 = vpop.f32.mrb[1].mxu0 }
  0xfb   : > { %v414_v21 = vadd.f32 %v2738_v17, %v413_v20  ;;  %v3202_v22 = vpop.f32.mrb[2].mxu0  ;;  %v3681_v20 = vld [vmem:[%s4372_s3 + $0xa0] sm:$0xff]  }
  0xfc   : > { %v446_v23 = vmax.f32 %v422_v19, 0.0  ;;  %v425_v24 = vadd.f32 %v3202_v22, %v2738_v17  ;;  %v416_v25 = vpop.f32.mrb[3].mxu0  ;;  %v3682_v22 = vld [vmem:[%s4372_s3 + $0xa8] sm:$0xff]  }
  0xfd   : > { %v444_v26 = vmax.f32 %v414_v21, 0.0  ;;  %v417_v27 = vadd.f32 %v2738_v17, %v416_v25 }
  0xfe   : > { %455 = vst.msk [vmem:[#allocation2 + $0x10] sm:$0xff] %vm452_vm1, %v446_v23  ;;  %v447_v28 = vmax.f32 %v425_v24, 0.0  ;;  %v3683_v23 = vld [vmem:[%s4372_s3 + $0xb0] sm:$0xff]   ;;  %v3684_v24 = vld [vmem:[%s4372_s3 + $0xb8] sm:$0xff]  }
  0xff   : > { %453 = vst.msk [vmem:[#allocation2] sm:$0xff] %vm452_vm1, %v444_v26  ;;  %v445_v29 = vmax.f32 %v417_v27, 0.0 }
 0x100   : > { %456 = vst.msk [vmem:[#allocation2 + $0x18] sm:$0xff] %vm452_vm1, %v447_v28  ;;  %v3685_v28 = vld [vmem:[%s4372_s3 + $0xc0] sm:$0xff]  }
 0x101   : > { %454 = vst.msk [vmem:[#allocation2 + $0x8] sm:$0xff] %vm452_vm1, %v445_v29  ;;  %v3205_v30 = vpop.f32.mrb[4].mxu0 }
 0x102   : > { %v438_v31 = vadd.f32 %v3205_v30, %v2738_v17  ;;  %v429_v32 = vpop.f32.mrb[5].mxu0  ;;  %v3686_v30 = vld [vmem:[%s4372_s3 + $0xc8] sm:$0xff]  }
 0x103   : > { %v430_v33 = vadd.f32 %v2738_v17, %v429_v32  ;;  %v3206_v34 = vpop.f32.mrb[6].mxu0  ;;  %v3688_v32 = vld [vmem:[%s4372_s3 + $0xd8] sm:$0xff]  }
 0x104   : > { %v450_v35 = vmax.f32 %v438_v31, 0.0  ;;  %v432_v36 = vpop.f32.mrb[7].mxu0  ;;  %v3687_v31 = vld [vmem:[%s4372_s3 + $0xd0] sm:$0xff]  }
 0x105   : > { %v448_v37 = vmax.f32 %v430_v33, 0.0  ;;  %v433_v38 = vadd.f32 %v2738_v17, %v432_v36  ;;  %v708_v49 = vld [vmem:[#allocation2 + $0x14] sm:$0x7]  ;;  %v473_v60 = vld [vmem:[#allocation2 + $0x10] sm:$0x7] }
 0x106   : > { %v484_v39 = vld [vmem:[#allocation2 + $0x4] sm:$0x7]  ;;  %459 = vst.msk [vmem:[#allocation2 + $0x30] sm:$0xff] %vm452_vm1, %v450_v35  ;;  %v469_v48 = vld [vmem:[#allocation2] sm:$0x7]  ;;  %v3912_v52 = vpack.c.bf16 %v708_v49, %v708_v49  ;;  %v3955_v62 = vpack.c.bf16 %v473_v60, %v473_v60 }
 0x107   : > { %v485_v41 = vpack.c.bf16 %v484_v39, %v484_v39  ;;  %457 = vst.msk [vmem:[#allocation2 + $0x20] sm:$0xff] %vm452_vm1, %v448_v37  ;;  %v449_v43 = vmax.f32 %v433_v38, 0.0  ;;  %v470_v50 = vpack.c.bf16 %v469_v48, %v469_v48  ;;  %v805_v57 = vld [vmem:[#allocation2 + $0x1] sm:$0x7]  ;;  %v921_v61 = vld [vmem:[#allocation2 + $0x11] sm:$0x7] }
 0x108   : > { %v620_v42 = vld [vmem:[#allocation2 + $0xc] sm:$0x7]  ;;  %v471_v56 = vld [vmem:[#allocation2 + $0x8] sm:$0x7]  ;;  %v806_v59 = vpack.c.bf16 %v805_v57, %v805_v57  ;;  %v3963_v0 = vpack.c.bf16 %v921_v61, %v921_v61  ;;  %v1595_v36 = vld [vmem:[#allocation2 + $0x18] sm:$0x7] }
 0x109   : > { %3216 = vmatmul.mubr.msk.bf16.vlgmr.msra.gmra.mrb[0].mxu1 %vm452_vm1, %v485_v41  ;;  %v3878_v44 = vpack.c.bf16 %v620_v42, %v620_v42  ;;  %458 = vst.msk [vmem:[#allocation2 + $0x28] sm:$0xff] %vm452_vm1, %v449_v43  ;;  %v3937_v58 = vpack.c.bf16 %v471_v56, %v471_v56  ;;  %v875_v5 = vld [vmem:[#allocation2 + $0x9] sm:$0x7]  ;;  %v3689_v38 = vld [vmem:[%s4372_s3 + $0xe0] sm:$0xff]   ;;  %v1596_v39 = vpack.c.bf16 %v1595_v36, %v1595_v36  ;;  %v3691_v41 = vld [vmem:[%s4372_s3 + $0xf0] sm:$0xff]  }
 0x10a   : > { %3220 = vmatpush3.bf16.msra.mxu1 %v3873_v40  ;;  %3227 = vmatprep.mubr.msk.bf16.mxu1 %vm3742_vm0, %v3741_v2  ;;  %v3987_v7 = vpack.c.bf16 %v875_v5, %v875_v5  ;;  %v3692_v42 = vld [vmem:[%s4372_s3 + $0xf8] sm:$0xff]   ;;  %v3693_v43 = vld [vmem:[%s4372_s3 + $0x100] sm:$0xff]  }
 0x10b   : > { %3240 = vmatmul.mubr.msk.bf16.vlgmr.msra.gmra.mrb[8].mxu0 %vm452_vm1, %v3878_v44  ;;  %3221 = vmatprep.subr.bf16.mxu1 %v3741_v2  ;;  %v1917_v48 = vld [vmem:[#allocation2 + $0x19] sm:$0x7] }
 0x10c   : > { %3256 = vmatpush3.bf16.msra.mxu0 %v3826_v13  ;;  %3263 = vmatprep.mubr.msk.bf16.mxu0 %vm3742_vm0, %v3741_v2 }
 0x10d   : > { %3257 = vmatprep.subr.bf16.mxu0 %v3741_v2  ;;  %v1092_v17 = vld [vmem:[#allocation2 + $0x30] sm:$0x7]  ;;  %v1263_v18 = vld [vmem:[#allocation2 + $0x34] sm:$0x7] }
 0x10e   : > { %3222 = vmatpush3.bf16.msra.mxu1 %v3666_v45  ;;  %v976_v13 = vld [vmem:[#allocation2 + $0x20] sm:$0x7]  ;;  %v1093_v19 = vpack.c.bf16 %v1092_v17, %v1092_v17  ;;  %v1264_v21 = vpack.c.bf16 %v1263_v18, %v1263_v18  ;;  %v1434_v35 = vld [vmem:[#allocation2 + $0x31] sm:$0x7]  ;;  %v3699_v17 = vld [vmem:[%s4374_s5 + $0x8] sm:$0xff]  }
 0x10f   : > { %3223 = vmatprep.subr.bf16.mxu1 %v3741_v2  ;;  %v1318_v33 = vld [vmem:[#allocation2 + $0x21] sm:$0x7]  ;;  %v1435_v37 = vpack.c.bf16 %v1434_v35, %v1434_v35 }
 0x110   : > { %3258 = vmatpush3.bf16.msra.mxu0 %v3835_v14  ;;  %v1046_v6 = vld [vmem:[#allocation2 + $0x28] sm:$0x7]  ;;  %v1147_v14 = vld [vmem:[#allocation2 + $0x24] sm:$0x7]  ;;  %v1217_v25 = vld [vmem:[#allocation2 + $0x2c] sm:$0x7]  ;;  %v1319_v34 = vpack.c.bf16 %v1318_v33, %v1318_v33 }
 0x111   : > { %3259 = vmatprep.subr.bf16.mxu0 %v3741_v2  ;;  %v1047_v9 = vpack.c.bf16 %v1046_v6, %v1046_v6  ;;  %v1388_v26 = vld [vmem:[#allocation2 + $0x29] sm:$0x7]  ;;  %v1218_v27 = vpack.c.bf16 %v1217_v25, %v1217_v25 }
 0x112   : > { %3224 = vmatpush3.bf16.msra.mxu1 %v3667_v46  ;;  %v1389_v29 = vpack.c.bf16 %v1388_v26, %v1388_v26 }
 0x113   : > { %3225 = vmatprep.subr.bf16.mxu1 %v3741_v2 }
 0x114   : > { %3260 = vmatpush3.bf16.msra.mxu0 %v3844_v15  ;;  %v977_v15 = vpack.c.bf16 %v976_v13, %v976_v13 }
 0x115   : > { %3261 = vmatprep.subr.bf16.mxu0 %v3741_v2 }
 0x116   : > { %3226 = vmatpush3.bf16.msra.mxu1 %v3668_v47 }
 0x117   : > { %3243 = vmatprep.subr.bf16.mxu1 %v3741_v2 }
 0x118   : > { %3262 = vmatpush3.bf16.msra.mxu0 %v3851_v16  ;;  %v1148_v16 = vpack.c.bf16 %v1147_v14, %v1147_v14 }
 0x119   : > { %3228 = vmatmul.mubr.msk.bf16.vlgmr.msra.gmra.mrb[4].mxu1 %vm452_vm1, %v470_v50  ;;  %3279 = vmatprep.subr.bf16.mxu0 %v3741_v2  ;;  %v1918_v50 = vpack.c.bf16 %v1917_v48, %v1917_v48 }
 0x11a   : > { %3244 = vmatpush3.bf16.msra.mxu1 %v3873_v40  ;;  %3251 = vmatprep.mubr.msk.bf16.mxu1 %vm3742_vm0, %v3741_v2 }
 0x11b   : > { %3264 = vmatmul.mubr.msk.bf16.vlgmr.msra.gmra.mrb[12].mxu0 %vm452_vm1, %v3912_v52  ;;  %3245 = vmatprep.subr.bf16.mxu1 %v3741_v2 }
 0x11c   : > { %3280 = vmatpush3.bf16.msra.mxu0 %v3669_v51  ;;  %3287 = vmatprep.mubr.msk.bf16.mxu0 %vm3742_vm0, %v3741_v2 }
 0x11d   : > { %3281 = vmatprep.subr.bf16.mxu0 %v3741_v2 }
 0x11e   : > { %3246 = vmatpush3.bf16.msra.mxu1 %v3666_v45 }
 0x11f   : > { %3247 = vmatprep.subr.bf16.mxu1 %v3741_v2 }
 0x120   : > { %3282 = vmatpush3.bf16.msra.mxu0 %v3670_v53 }
 0x121   : > { %3283 = vmatprep.subr.bf16.mxu0 %v3741_v2 }
 0x122   : > { %3248 = vmatpush3.bf16.msra.mxu1 %v3667_v46 }
 0x123   : > { %3249 = vmatprep.subr.bf16.mxu1 %v3741_v2 }
 0x124   : > { %3284 = vmatpush3.bf16.msra.mxu0 %v3671_v54 }
 0x125   : > { %3285 = vmatprep.subr.bf16.mxu0 %v3741_v2 }
 0x126   : > { %3250 = vmatpush3.bf16.msra.mxu1 %v3668_v47 }
 0x127   : > { %3267 = vmatprep.subr.bf16.mxu1 %v3741_v2 }
 0x128   : > { %3286 = vmatpush3.bf16.msra.mxu0 %v3672_v55 }
 0x129   : > { %3252 = vmatmul.mubr.msk.bf16.vlgmr.msra.gmra.mrb[8].mxu1 %vm452_vm1, %v3937_v58  ;;  %3303 = vmatprep.subr.bf16.mxu0 %v3741_v2 }
 0x12a   : > { %3268 = vmatpush3.bf16.msra.mxu1 %v3873_v40  ;;  %3275 = vmatprep.mubr.msk.bf16.mxu1 %vm3742_vm0, %v3741_v2  ;;  %v3690_v40 = vld [vmem:[%s4372_s3 + $0xe8] sm:$0xff]  }
 0x12b   : > { %3288 = vmatmul.mubr.msk.bf16.vlgmr.msra.gmra.mrb[16].mxu0 %vm452_vm1, %v806_v59  ;;  %3269 = vmatprep.subr.bf16.mxu1 %v3741_v2 }
 0x12c   : > { %3304 = vmatpush3.bf16.msra.mxu0 %v3669_v51  ;;  %3311 = vmatprep.mubr.msk.bf16.mxu0 %vm3742_vm0, %v3741_v2 }
 0x12d   : > { %3305 = vmatprep.subr.bf16.mxu0 %v3741_v2 }
 0x12e   : > { %3270 = vmatpush3.bf16.msra.mxu1 %v3666_v45  ;;  %v3694_v45 = vld [vmem:[%s4372_s3 + $0x108] sm:$0xff]  }
 0x12f   : > { %3271 = vmatprep.subr.bf16.mxu1 %v3741_v2 }
 0x130   : > { %3306 = vmatpush3.bf16.msra.mxu0 %v3670_v53 }
 0x131   : > { %3307 = vmatprep.subr.bf16.mxu0 %v3741_v2 }
 0x132   : > { %3272 = vmatpush3.bf16.msra.mxu1 %v3667_v46  ;;  %v3695_v46 = vld [vmem:[%s4372_s3 + $0x110] sm:$0xff]  }
 0x133   : > { %3273 = vmatprep.subr.bf16.mxu1 %v3741_v2 }
 0x134   : > { %3308 = vmatpush3.bf16.msra.mxu0 %v3671_v54 }
 0x135   : > { %3309 = vmatprep.subr.bf16.mxu0 %v3741_v2 }
 0x136   : > { %3274 = vmatpush3.bf16.msra.mxu1 %v3668_v47  ;;  %v3696_v47 = vld [vmem:[%s4372_s3 + $0x118] sm:$0xff]  }
 0x137   : > { %3291 = vmatprep.subr.bf16.mxu1 %v3741_v2 }
 0x138   : > { %3310 = vmatpush3.bf16.msra.mxu0 %v3672_v55 }
 0x139   : > { %3276 = vmatmul.mubr.msk.bf16.vlgmr.msra.gmra.mrb[12].mxu1 %vm452_vm1, %v3955_v62  ;;  %3327 = vmatprep.subr.bf16.mxu0 %v3741_v2 }
 0x13a   : > { %3292 = vmatpush3.bf16.msra.mxu1 %v3669_v51  ;;  %3299 = vmatprep.mubr.msk.bf16.mxu1 %vm3742_vm0, %v3741_v2 }
 0x13b   : > { %3312 = vmatmul.mubr.msk.bf16.vlgmr.msra.gmra.mrb[20].mxu0 %vm452_vm1, %v3963_v0  ;;  %3293 = vmatprep.subr.bf16.mxu1 %v3741_v2 }
 0x13c   : > { %3328 = vmatpush3.bf16.msra.mxu0 %v3673_v63  ;;  %3335 = vmatprep.mubr.msk.bf16.mxu0 %vm3742_vm0, %v3741_v2 }
 0x13d   : > { %3329 = vmatprep.subr.bf16.mxu0 %v3741_v2 }
 0x13e   : > { %3294 = vmatpush3.bf16.msra.mxu1 %v3670_v53 }
 0x13f   : > { %3295 = vmatprep.subr.bf16.mxu1 %v3741_v2 }
 0x140   : > { %3330 = vmatpush3.bf16.msra.mxu0 %v3674_v1 }
 0x141   : > { %3331 = vmatprep.subr.bf16.mxu0 %v3741_v2 }
 0x142   : > { %3296 = vmatpush3.bf16.msra.mxu1 %v3671_v54 }
 0x143   : > { %3297 = vmatprep.subr.bf16.mxu1 %v3741_v2 }
 0x144   : > { %3332 = vmatpush3.bf16.msra.mxu0 %v3675_v3 }
 0x145   : > { %3333 = vmatprep.subr.bf16.mxu0 %v3741_v2 }
 0x146   : > { %3298 = vmatpush3.bf16.msra.mxu1 %v3672_v55 }
 0x147   : > { %3315 = vmatprep.subr.bf16.mxu1 %v3741_v2 }
 0x148   : > { %3334 = vmatpush3.bf16.msra.mxu0 %v3676_v4 }
 0x149   : > { %3300 = vmatmul.mubr.msk.bf16.vlgmr.msra.gmra.mrb[16].mxu1 %vm452_vm1, %v3987_v7  ;;  %3351 = vmatprep.subr.bf16.mxu0 %v3741_v2 }
 0x14a   : > { %3316 = vmatpush3.bf16.msra.mxu1 %v3673_v63  ;;  %3323 = vmatprep.mubr.msk.bf16.mxu1 %vm3742_vm0, %v3741_v2 }
 0x14b   : > { %3336 = vmatmul.mubr.msk.bf16.vlgmr.msra.gmra.mrb[24].mxu0 %vm452_vm1, %v1047_v9  ;;  %3317 = vmatprep.subr.bf16.mxu1 %v3741_v2 }
 0x14c   : > { %3352 = vmatpush3.bf16.msra.mxu0 %v3677_v8  ;;  %3359 = vmatprep.mubr.msk.bf16.mxu0 %vm3742_vm0, %v3741_v2 }
 0x14d   : > { %3353 = vmatprep.subr.bf16.mxu0 %v3741_v2 }
 0x14e   : > { %3318 = vmatpush3.bf16.msra.mxu1 %v3674_v1 }
 0x14f   : > { %3319 = vmatprep.subr.bf16.mxu1 %v3741_v2 }
 0x150   : > { %3354 = vmatpush3.bf16.msra.mxu0 %v3678_v10 }
 0x151   : > { %3355 = vmatprep.subr.bf16.mxu0 %v3741_v2 }
 0x152   : > { %3320 = vmatpush3.bf16.msra.mxu1 %v3675_v3 }
 0x153   : > { %3321 = vmatprep.subr.bf16.mxu1 %v3741_v2 }
 0x154   : > { %3356 = vmatpush3.bf16.msra.mxu0 %v3679_v11 }
 0x155   : > { %3357 = vmatprep.subr.bf16.mxu0 %v3741_v2 }
 0x156   : > { %3322 = vmatpush3.bf16.msra.mxu1 %v3676_v4 }
 0x157   : > { %3339 = vmatprep.subr.bf16.mxu1 %v3741_v2 }
 0x158   : > { %3358 = vmatpush3.bf16.msra.mxu0 %v3680_v12 }
 0x159   : > { %3324 = vmatmul.mubr.msk.bf16.vlgmr.msra.gmra.mrb[20].mxu1 %vm452_vm1, %v977_v15  ;;  %3375 = vmatprep.subr.bf16.mxu0 %v3741_v2  ;;  %v3697_v15 = vld [vmem:[%s4374_s5] sm:$0xff]  }
 0x15a   : > { %3340 = vmatpush3.bf16.msra.mxu1 %v3673_v63  ;;  %3347 = vmatprep.mubr.msk.bf16.mxu1 %vm3742_vm0, %v3741_v2 }
 0x15b   : > { %3360 = vmatmul.mubr.msk.bf16.vlgmr.msra.gmra.mrb[28].mxu0 %vm452_vm1, %v1148_v16  ;;  %3341 = vmatprep.subr.bf16.mxu1 %v3741_v2  ;;  %v3698_v16 = vld [vmem:[%s4374_s5 + $0x20] sm:$0xff]  }
 0x15c   : > { %3376 = vmatpush3.bf16.msra.mxu0 %v3677_v8  ;;  %3383 = vmatprep.mubr.msk.bf16.mxu0 %vm3742_vm0, %v3741_v2 }
 0x15d   : > { %3377 = vmatprep.subr.bf16.mxu0 %v3741_v2 }
 0x15e   : > { %3342 = vmatpush3.bf16.msra.mxu1 %v3674_v1 }
 0x15f   : > { %3343 = vmatprep.subr.bf16.mxu1 %v3741_v2 }
 0x160   : > { %3378 = vmatpush3.bf16.msra.mxu0 %v3678_v10 }
 0x161   : > { %3379 = vmatprep.subr.bf16.mxu0 %v3741_v2 }
 0x162   : > { %3344 = vmatpush3.bf16.msra.mxu1 %v3675_v3 }
 0x163   : > { %3345 = vmatprep.subr.bf16.mxu1 %v3741_v2 }
 0x164   : > { %3380 = vmatpush3.bf16.msra.mxu0 %v3679_v11 }
 0x165   : > { %3381 = vmatprep.subr.bf16.mxu0 %v3741_v2 }
 0x166   : > { %3346 = vmatpush3.bf16.msra.mxu1 %v3676_v4 }
 0x167   : > { %3363 = vmatprep.subr.bf16.mxu1 %v3741_v2 }
 0x168   : > { %3382 = vmatpush3.bf16.msra.mxu0 %v3680_v12 }
 0x169   : > { %3348 = vmatmul.mubr.msk.bf16.vlgmr.msra.gmra.mrb[24].mxu1 %vm452_vm1, %v1093_v19  ;;  %3399 = vmatprep.subr.bf16.mxu0 %v3741_v2  ;;  %v3700_v19 = vld [vmem:[%s4374_s5 + $0x28] sm:$0xff]  }
 0x16a   : > { %3364 = vmatpush3.bf16.msra.mxu1 %v3677_v8  ;;  %3371 = vmatprep.mubr.msk.bf16.mxu1 %vm3742_vm0, %v3741_v2 }
 0x16b   : > { %3384 = vmatmul.mubr.msk.bf16.vlgmr.msra.gmra.mrb[32].mxu0 %vm452_vm1, %v1264_v21  ;;  %3365 = vmatprep.subr.bf16.mxu1 %v3741_v2 }
 0x16c   : > { %3400 = vmatpush3.bf16.msra.mxu0 %v3681_v20  ;;  %3407 = vmatprep.mubr.msk.bf16.mxu0 %vm3742_vm0, %v3741_v2 }
 0x16d   : > { %3401 = vmatprep.subr.bf16.mxu0 %v3741_v2 }
 0x16e   : > { %3366 = vmatpush3.bf16.msra.mxu1 %v3678_v10 }
 0x16f   : > { %3367 = vmatprep.subr.bf16.mxu1 %v3741_v2 }
 0x170   : > { %3402 = vmatpush3.bf16.msra.mxu0 %v3682_v22 }
 0x171   : > { %3403 = vmatprep.subr.bf16.mxu0 %v3741_v2 }
 0x172   : > { %3368 = vmatpush3.bf16.msra.mxu1 %v3679_v11 }
 0x173   : > { %3369 = vmatprep.subr.bf16.mxu1 %v3741_v2 }
 0x174   : > { %3404 = vmatpush3.bf16.msra.mxu0 %v3683_v23 }
 0x175   : > { %3405 = vmatprep.subr.bf16.mxu0 %v3741_v2 }
 0x176   : > { %3370 = vmatpush3.bf16.msra.mxu1 %v3680_v12 }
 0x177   : > { %3387 = vmatprep.subr.bf16.mxu1 %v3741_v2 }
 0x178   : > { %3406 = vmatpush3.bf16.msra.mxu0 %v3684_v24 }
 0x179   : > { %3372 = vmatmul.mubr.msk.bf16.vlgmr.msra.gmra.mrb[28].mxu1 %vm452_vm1, %v1218_v27  ;;  %3423 = vmatprep.subr.bf16.mxu0 %v3741_v2  ;;  %v3701_v27 = vld [vmem:[%s4374_s5 + $0x10] sm:$0xff]  }
 0x17a   : > { %3388 = vmatpush3.bf16.msra.mxu1 %v3681_v20  ;;  %3395 = vmatprep.mubr.msk.bf16.mxu1 %vm3742_vm0, %v3741_v2 }
 0x17b   : > { %3408 = vmatmul.mubr.msk.bf16.vlgmr.msra.gmra.mrb[36].mxu0 %vm452_vm1, %v1389_v29  ;;  %3389 = vmatprep.subr.bf16.mxu1 %v3741_v2  ;;  %v3702_v29 = vld [vmem:[%s4374_s5 + $0x30] sm:$0xff]  }
 0x17c   : > { %3424 = vmatpush3.bf16.msra.mxu0 %v3685_v28  ;;  %3431 = vmatprep.mubr.msk.bf16.mxu0 %vm3742_vm0, %v3741_v2 }
 0x17d   : > { %3425 = vmatprep.subr.bf16.mxu0 %v3741_v2 }
 0x17e   : > { %3390 = vmatpush3.bf16.msra.mxu1 %v3682_v22 }
 0x17f   : > { %3391 = vmatprep.subr.bf16.mxu1 %v3741_v2 }
 0x180   : > { %3426 = vmatpush3.bf16.msra.mxu0 %v3686_v30 }
 0x181   : > { %3427 = vmatprep.subr.bf16.mxu0 %v3741_v2 }
 0x182   : > { %3392 = vmatpush3.bf16.msra.mxu1 %v3683_v23 }
 0x183   : > { %3393 = vmatprep.subr.bf16.mxu1 %v3741_v2 }
 0x184   : > { %3428 = vmatpush3.bf16.msra.mxu0 %v3687_v31 }
 0x185   : > { %3429 = vmatprep.subr.bf16.mxu0 %v3741_v2 }
 0x186   : > { %3394 = vmatpush3.bf16.msra.mxu1 %v3684_v24 }
 0x187   : > { %3411 = vmatprep.subr.bf16.mxu1 %v3741_v2 }
 0x188   : > { %3430 = vmatpush3.bf16.msra.mxu0 %v3688_v32 }
 0x189   : > { %3396 = vmatmul.mubr.msk.bf16.vlgmr.msra.gmra.mrb[32].mxu1 %vm452_vm1, %v1319_v34  ;;  %3447 = vmatprep.subr.bf16.mxu0 %v3741_v2 }
 0x18a   : > { %3412 = vmatpush3.bf16.msra.mxu1 %v3681_v20  ;;  %3419 = vmatprep.mubr.msk.bf16.mxu1 %vm3742_vm0, %v3741_v2 }
 0x18b   : > { %3432 = vmatmul.mubr.msk.bf16.vlgmr.msra.gmra.mrb[40].mxu0 %vm452_vm1, %v3937_v58  ;;  %3413 = vmatprep.subr.bf16.mxu1 %v3741_v2 }
 0x18c   : > { %3448 = vmatpush3.bf16.msra.mxu0 %v3685_v28  ;;  %3455 = vmatprep.mubr.msk.bf16.mxu0 %vm3742_vm0, %v3741_v2 }
 0x18d   : > { %3449 = vmatprep.subr.bf16.mxu0 %v3741_v2 }
 0x18e   : > { %3414 = vmatpush3.bf16.msra.mxu1 %v3682_v22 }
 0x18f   : > { %3415 = vmatprep.subr.bf16.mxu1 %v3741_v2 }
 0x190   : > { %3450 = vmatpush3.bf16.msra.mxu0 %v3686_v30 }
 0x191   : > { %3451 = vmatprep.subr.bf16.mxu0 %v3741_v2 }
 0x192   : > { %3416 = vmatpush3.bf16.msra.mxu1 %v3683_v23 }
 0x193   : > { %3417 = vmatprep.subr.bf16.mxu1 %v3741_v2 }
 0x194   : > { %3452 = vmatpush3.bf16.msra.mxu0 %v3687_v31 }
 0x195   : > { %3453 = vmatprep.subr.bf16.mxu0 %v3741_v2 }
 0x196   : > { %3418 = vmatpush3.bf16.msra.mxu1 %v3684_v24 }
 0x197   : > { %3435 = vmatprep.subr.bf16.mxu1 %v3741_v2 }
 0x198   : > { %3454 = vmatpush3.bf16.msra.mxu0 %v3688_v32 }
 0x199   : > { %3420 = vmatmul.mubr.msk.bf16.vlgmr.msra.gmra.mrb[36].mxu1 %vm452_vm1, %v1435_v37  ;;  %3471 = vmatprep.subr.bf16.mxu0 %v3741_v2 }
 0x19a   : > { %3436 = vmatpush3.bf16.msra.mxu1 %v3685_v28  ;;  %3443 = vmatprep.mubr.msk.bf16.mxu1 %vm3742_vm0, %v3741_v2 }
 0x19b   : > { %3456 = vmatmul.mubr.msk.bf16.vlgmr.msra.gmra.mrb[44].mxu0 %vm452_vm1, %v1596_v39  ;;  %3437 = vmatprep.subr.bf16.mxu1 %v3741_v2 }
 0x19c   : > { %3472 = vmatpush3.bf16.msra.mxu0 %v3689_v38  ;;  %3479 = vmatprep.mubr.msk.bf16.mxu0 %vm3742_vm0, %v3741_v2 }
 0x19d   : > { %3473 = vmatprep.subr.bf16.mxu0 %v3741_v2 }
 0x19e   : > { %3438 = vmatpush3.bf16.msra.mxu1 %v3686_v30 }
 0x19f   : > { %3439 = vmatprep.subr.bf16.mxu1 %v3741_v2 }
 0x1a0   : > { %3474 = vmatpush3.bf16.msra.mxu0 %v3690_v40 }
 0x1a1   : > { %3475 = vmatprep.subr.bf16.mxu0 %v3741_v2 }
 0x1a2   : > { %3440 = vmatpush3.bf16.msra.mxu1 %v3687_v31  ;;  %v3703_v31 = vld [vmem:[%s4374_s5 + $0x18] sm:$0xff]  }
 0x1a3   : > { %3441 = vmatprep.subr.bf16.mxu1 %v3741_v2 }
 0x1a4   : > { %3476 = vmatpush3.bf16.msra.mxu0 %v3691_v41 }
 0x1a5   : > { %3477 = vmatprep.subr.bf16.mxu0 %v3741_v2 }
 0x1a6   : > { %3442 = vmatpush3.bf16.msra.mxu1 %v3688_v32  ;;  %v3704_v32 = vld [vmem:[%s4374_s5 + $0x38] sm:$0xff]  }
 0x1a7   : > { %3459 = vmatprep.subr.bf16.mxu1 %v3741_v2 }
 0x1a8   : > { %3478 = vmatpush3.bf16.msra.mxu0 %v3692_v42 }
 0x1a9   : > { %3444 = vmatmul.mubr.msk.bf16.vlgmr.msra.gmra.mrb[40].mxu1 %vm452_vm1, %v3955_v62  ;;  %3495 = vmatprep.subr.bf16.mxu0 %v3741_v2 }
 0x1aa   : > { %3460 = vmatpush3.bf16.msra.mxu1 %v3689_v38  ;;  %3467 = vmatprep.mubr.msk.bf16.mxu1 %vm3742_vm0, %v3741_v2 }
 0x1ab   : > { %3480 = vmatmul.mubr.msk.bf16.vlgmr.msra.gmra.mrb[48].mxu0 %vm452_vm1, %v3912_v52  ;;  %3461 = vmatprep.subr.bf16.mxu1 %v3741_v2 }
 0x1ac   : > { %3496 = vmatpush3.bf16.msra.mxu0 %v3693_v43  ;;  %3503 = vmatprep.mubr.msk.bf16.mxu0 %vm3742_vm0, %v3741_v2 }
 0x1ad   : > { %3497 = vmatprep.subr.bf16.mxu0 %v3741_v2 }
 0x1ae   : > { %3462 = vmatpush3.bf16.msra.mxu1 %v3690_v40 }
 0x1af   : > { %3463 = vmatprep.subr.bf16.mxu1 %v3741_v2 }
 0x1b0   : > { %3498 = vmatpush3.bf16.msra.mxu0 %v3694_v45 }
 0x1b1   : > { %3499 = vmatprep.subr.bf16.mxu0 %v3741_v2 }
 0x1b2   : > { %3464 = vmatpush3.bf16.msra.mxu1 %v3691_v41 }
 0x1b3   : > { %3465 = vmatprep.subr.bf16.mxu1 %v3741_v2 }
 0x1b4   : > { %3500 = vmatpush3.bf16.msra.mxu0 %v3695_v46 }
 0x1b5   : > { %3501 = vmatprep.subr.bf16.mxu0 %v3741_v2 }
 0x1b6   : > { %3466 = vmatpush3.bf16.msra.mxu1 %v3692_v42 }
 0x1b7   : > { %3483 = vmatprep.subr.bf16.mxu1 %v3741_v2 }
 0x1b8   : > { %3502 = vmatpush3.bf16.msra.mxu0 %v3696_v47 }
 0x1b9   : > { %3468 = vmatmul.mubr.msk.bf16.vlgmr.msra.gmra.mrb[44].mxu1 %vm452_vm1, %v3878_v44  ;;  %3519 = vmatprep.subr.bf16.mxu0 %v3741_v2  ;;  %v1756_v44 = vld [vmem:[#allocation2 + $0x1c] sm:$0x7] }
 0x1ba   : > { %3484 = vmatpush3.bf16.msra.mxu1 %v3689_v38  ;;  %3491 = vmatprep.mubr.msk.bf16.mxu1 %vm3742_vm0, %v3741_v2  ;;  %v1757_v49 = vpack.c.bf16 %v1756_v44, %v1756_v44 }
 0x1bb   : > { %3504 = vmatmul.mubr.msk.bf16.vlgmr.msra.gmra.mrb[52].mxu0 %vm452_vm1, %v3987_v7  ;;  %3485 = vmatprep.subr.bf16.mxu1 %v3741_v2 }
 0x1bc   : > { %3520 = vmatpush3.bf16.msra.mxu0 %v3693_v43  ;;  %3527 = vmatprep.mubr.msk.bf16.mxu0 %vm3742_vm0, %v3741_v2 }
 0x1bd   : > { %3521 = vmatprep.subr.bf16.mxu0 %v3741_v2 }
 0x1be   : > { %3486 = vmatpush3.bf16.msra.mxu1 %v3690_v40 }
 0x1bf   : > { %3487 = vmatprep.subr.bf16.mxu1 %v3741_v2 }
 0x1c0   : > { %3522 = vmatpush3.bf16.msra.mxu0 %v3694_v45 }
 0x1c1   : > { %3523 = vmatprep.subr.bf16.mxu0 %v3741_v2 }
 0x1c2   : > { %3488 = vmatpush3.bf16.msra.mxu1 %v3691_v41 }
 0x1c3   : > { %3489 = vmatprep.subr.bf16.mxu1 %v3741_v2 }
 0x1c4   : > { %3524 = vmatpush3.bf16.msra.mxu0 %v3695_v46 }
 0x1c5   : > { %3525 = vmatprep.subr.bf16.mxu0 %v3741_v2 }
 0x1c6   : > { %3490 = vmatpush3.bf16.msra.mxu1 %v3692_v42 }
 0x1c7   : > { %3507 = vmatprep.subr.bf16.mxu1 %v3741_v2 }
 0x1c8   : > { %3526 = vmatpush3.bf16.msra.mxu0 %v3696_v47 }
 0x1c9   : > { %3492 = vmatmul.mubr.msk.bf16.vlgmr.msra.gmra.mrb[48].mxu1 %vm452_vm1, %v1757_v49  ;;  %3543 = vmatprep.subr.bf16.mxu0 %v3741_v2 }
 0x1ca   : > { %3508 = vmatpush3.bf16.msra.mxu1 %v3693_v43  ;;  %3515 = vmatprep.mubr.msk.bf16.mxu1 %vm3742_vm0, %v3741_v2 }
 0x1cb   : > { %3528 = vmatmul.mubr.msk.bf16.vlgmr.msra.gmra.mrb[56].mxu0 %vm452_vm1, %v1918_v50  ;;  %3509 = vmatprep.subr.bf16.mxu1 %v3741_v2 }
 0x1cc   : > { %3551 = vmatprep.mubr.msk.bf16.mxu0 %vm3742_vm0, %v3741_v2  ;;  %3544 = vmatpush3.bf16.msra.mxu0 %v3697_v15 }
 0x1cd   : > { %3545 = vmatprep.subr.bf16.mxu0 %v3741_v2 }
 0x1ce   : > { %3510 = vmatpush3.bf16.msra.mxu1 %v3694_v45 }
 0x1cf   : > { %3511 = vmatprep.subr.bf16.mxu1 %v3741_v2 }
 0x1d0   : > { %3546 = vmatpush3.bf16.msra.mxu0 %v3699_v17 }
 0x1d1   : > { %3547 = vmatprep.subr.bf16.mxu0 %v3741_v2 }
 0x1d2   : > { %3512 = vmatpush3.bf16.msra.mxu1 %v3695_v46 }
 0x1d3   : > { %3513 = vmatprep.subr.bf16.mxu1 %v3741_v2 }
 0x1d4   : > { %3548 = vmatpush3.bf16.msra.mxu0 %v3701_v27 }
 0x1d5   : > { %3549 = vmatprep.subr.bf16.mxu0 %v3741_v2 }
 0x1d6   : > { %3514 = vmatpush3.bf16.msra.mxu1 %v3696_v47 }
 0x1d7   : > { %3531 = vmatprep.subr.bf16.mxu1 %v3741_v2 }
 0x1d8   : > { %3550 = vmatpush3.bf16.msra.mxu0 %v3703_v31 }
 0x1d9   : > { %3516 = vmatmul.mubr.msk.bf16.vlgmr.msra.gmra.mrb[52].mxu1 %vm452_vm1, %v3963_v0  ;;  %3567 = vmatprep.subr.bf16.mxu0 %v3741_v2 }
 0x1da   : > { %3539 = vmatprep.mubr.msk.bf16.mxu1 %vm3742_vm0, %v3741_v2  ;;  %3532 = vmatpush3.bf16.msra.mxu1 %v3698_v16 }
 0x1db   : > { %3533 = vmatprep.subr.bf16.mxu1 %v3741_v2 }
 0x1dc   : > { %v547_v51 = vpop.f32.mrb[0].mxu1 }
 0x1dd   : > { %v3217_v52 = vpop.f32.mrb[1].mxu1 }
 0x1de   : > { %v550_v53 = vpop.f32.mrb[2].mxu1  ;;  %v659_v54 = vpop.f32.mrb[8].mxu0  ;;  %3534 = vmatpush3.bf16.msra.mxu1 %v3700_v19 }
 0x1df   : > { %v3218_v55 = vpop.f32.mrb[3].mxu1  ;;  %v3241_v56 = vpop.f32.mrb[9].mxu0  ;;  %3535 = vmatprep.subr.bf16.mxu1 %v3741_v2 }
 0x1e0   : > { %v662_v57 = vpop.f32.mrb[10].mxu0 }
 0x1e1   : > { %v3242_v58 = vpop.f32.mrb[11].mxu0 }
 0x1e2   : > { %3536 = vmatpush3.bf16.msra.mxu1 %v3702_v29 }
 0x1e3   : > { %3537 = vmatprep.subr.bf16.mxu1 %v3741_v2 }
 0x1e6   : > { %3538 = vmatpush3.bf16.msra.mxu1 %v3704_v32 }
 0x1e7   : > { %3555 = vmatprep.subr.bf16.mxu1 %v3741_v2 }
 0x1ec   : > { %v614_v59 = vpop.f32.mrb[4].mxu1 }
 0x1ed   : > { %v615_v60 = vadd.f32 %v614_v59, %v547_v51  ;;  %v3229_v61 = vpop.f32.mrb[5].mxu1 }
 0x1ee   : > { %v617_v62 = vpop.f32.mrb[6].mxu1  ;;  %v747_v63 = vpop.f32.mrb[12].mxu0 }
 0x1ef   : > { %v3230_v1 = vpop.f32.mrb[7].mxu1  ;;  %v3265_v3 = vpop.f32.mrb[13].mxu0 }
 0x1f0   : > { %v750_v4 = vpop.f32.mrb[14].mxu0 }
 0x1f1   : > { %v3266_v0 = vpop.f32.mrb[15].mxu0 }
 0x1fc   : > { %v702_v5 = vpop.f32.mrb[8].mxu1 }
 0x1fd   : > { %v703_v6 = vadd.f32 %v702_v5, %v659_v54  ;;  %v3253_v7 = vpop.f32.mrb[9].mxu1 }
 0x1fe   : > { %v705_v8 = vpop.f32.mrb[10].mxu1  ;;  %v868_v9 = vpop.f32.mrb[16].mxu0 }
 0x1ff   : > { %v874_v10 = vadd.f32 %v868_v9, %v615_v60  ;;  %v3254_v11 = vpop.f32.mrb[11].mxu1  ;;  %v3289_v12 = vpop.f32.mrb[17].mxu0 }
 0x200   : > { %v871_v13 = vpop.f32.mrb[18].mxu0 }
 0x201   : > { %v3290_v14 = vpop.f32.mrb[19].mxu0 }
 0x20c   : > { %v790_v18 = vpop.f32.mrb[12].mxu1 }
 0x20d   : > { %v791_v20 = vadd.f32 %v790_v18, %v747_v63  ;;  %v3277_v21 = vpop.f32.mrb[13].mxu1 }
 0x20e   : > { %v793_v22 = vpop.f32.mrb[14].mxu1  ;;  %v960_v23 = vpop.f32.mrb[20].mxu0 }
 0x20f   : > { %v966_v24 = vadd.f32 %v960_v23, %v791_v20  ;;  %v3278_v25 = vpop.f32.mrb[15].mxu1  ;;  %v3313_v26 = vpop.f32.mrb[21].mxu0 }
 0x210   : > { %v963_v28 = vpop.f32.mrb[22].mxu0 }
 0x211   : > { %v3314_v30 = vpop.f32.mrb[23].mxu0 }
 0x21c   : > { %v914_v33 = vpop.f32.mrb[16].mxu1 }
 0x21d   : > { %v920_v34 = vadd.f32 %v914_v33, %v703_v6  ;;  %v3301_v35 = vpop.f32.mrb[17].mxu1 }
 0x21e   : > { %v917_v36 = vpop.f32.mrb[18].mxu1  ;;  %v1085_v37 = vpop.f32.mrb[24].mxu0 }
 0x21f   : > { %v1091_v38 = vadd.f32 %v1085_v37, %v920_v34  ;;  %v3302_v39 = vpop.f32.mrb[19].mxu1  ;;  %v3337_v40 = vpop.f32.mrb[25].mxu0 }
 0x220   : > { %v1088_v41 = vpop.f32.mrb[26].mxu0 }
 0x221   : > { %v3338_v42 = vpop.f32.mrb[27].mxu0 }
 0x22c   : > { %v1039_v43 = vpop.f32.mrb[20].mxu1 }
 0x22d   : > { %v1045_v45 = vadd.f32 %v1039_v43, %v874_v10  ;;  %v3325_v46 = vpop.f32.mrb[21].mxu1 }
 0x22e   : > { %v1042_v47 = vpop.f32.mrb[22].mxu1  ;;  %v1210_v44 = vpop.f32.mrb[28].mxu0  ;;  %v4220_v46 = vld [vmem:[%s4373_s4] ss:$0 sm:$0xff] }
 0x22f   : > { %v1216_v48 = vadd.f32 %v1210_v44, %v1045_v45  ;;  %v3326_v49 = vpop.f32.mrb[23].mxu1  ;;  %v3361_v50 = vpop.f32.mrb[29].mxu0 }
 0x230   : > { %v1213_v51 = vpop.f32.mrb[30].mxu0 }
 0x231   : > { %v3362_v52 = vpop.f32.mrb[31].mxu0 }
 0x23c   : > { %v1131_v53 = vpop.f32.mrb[24].mxu1 }
 0x23d   : > { %v1137_v54 = vadd.f32 %v1131_v53, %v966_v24  ;;  %v3349_v55 = vpop.f32.mrb[25].mxu1  ;;  %v3709_v53 = vld [vmem:[%s4374_s5 + $0x60] sm:$0xff]  }
 0x23e   : > { %v1134_v56 = vpop.f32.mrb[26].mxu1  ;;  %v1302_v57 = vpop.f32.mrb[32].mxu0  ;;  %v3705_v55 = vld [vmem:[%s4374_s5 + $0x40] sm:$0xff]  }
 0x23f   : > { %v1308_v58 = vadd.f32 %v1302_v57, %v1137_v54  ;;  %v3350_v59 = vpop.f32.mrb[27].mxu1  ;;  %v3385_v60 = vpop.f32.mrb[33].mxu0  ;;  %v3710_v57 = vld [vmem:[%s4374_s5 + $0x68] sm:$0xff]  }
 0x240   : > { %v1305_v61 = vpop.f32.mrb[34].mxu0  ;;  %v3712_v60 = vld [vmem:[%s4374_s5 + $0x70] sm:$0xff]  }
 0x241   : > { %v3386_v62 = vpop.f32.mrb[35].mxu0 }
 0x24c   : > { %v1256_v63 = vpop.f32.mrb[28].mxu1 }
 0x24d   : > { %v1262_v1 = vadd.f32 %v1256_v63, %v1091_v38  ;;  %v3373_v3 = vpop.f32.mrb[29].mxu1 }
 0x24e   : > { %v1259_v4 = vpop.f32.mrb[30].mxu1  ;;  %v1427_v0 = vpop.f32.mrb[36].mxu0  ;;  %v3707_v3 = vld [vmem:[%s4374_s5 + $0x50] sm:$0xff]  }
 0x24f   : > { %v1433_v5 = vadd.f32 %v1427_v0, %v1262_v1  ;;  %v3374_v6 = vpop.f32.mrb[31].mxu1  ;;  %v3409_v7 = vpop.f32.mrb[37].mxu0 }
 0x250   : > { %v1430_v8 = vpop.f32.mrb[38].mxu0  ;;  %v3714_v7 = vld [vmem:[%s4374_s5 + $0x78] sm:$0xff]  }
 0x251   : > { %v3410_v9 = vpop.f32.mrb[39].mxu0 }
 0x252   : > { %v3708_v9 = vld [vmem:[%s4374_s5 + $0x58] sm:$0xff]  }
 0x25c   : > { %v1381_v10 = vpop.f32.mrb[32].mxu1 }
 0x25d   : > { %v1387_v11 = vadd.f32 %v1381_v10, %v1216_v48  ;;  %v3397_v12 = vpop.f32.mrb[33].mxu1  ;;  %v3711_v10 = vld [vmem:[%s4374_s5 + $0x80] sm:$0xff]  }
 0x25e   : > { %v1384_v13 = vpop.f32.mrb[34].mxu1  ;;  %v1547_v14 = vpop.f32.mrb[40].mxu0  ;;  %v3713_v12 = vld [vmem:[%s4374_s5 + $0x88] sm:$0xff]  }
 0x25f   : > { %v1553_v15 = vadd.f32 %v1547_v14, %v1387_v11  ;;  %v3398_v16 = vpop.f32.mrb[35].mxu1  ;;  %v3433_v17 = vpop.f32.mrb[41].mxu0 }
 0x260   : > { %v1550_v18 = vpop.f32.mrb[42].mxu0  ;;  %v3715_v17 = vld [vmem:[%s4374_s5 + $0x90] sm:$0xff]  }
 0x261   : > { %v3434_v19 = vpop.f32.mrb[43].mxu0 }
 0x26c   : > { %v1473_v20 = vpop.f32.mrb[36].mxu1 }
 0x26d   : > { %v1479_v21 = vadd.f32 %v1473_v20, %v1308_v58  ;;  %v3421_v22 = vpop.f32.mrb[37].mxu1  ;;  %v3706_v58 = vld [vmem:[%s4374_s5 + $0x48] sm:$0xff]  }
 0x26e   : > { %v1476_v23 = vpop.f32.mrb[38].mxu1  ;;  %v1634_v24 = vpop.f32.mrb[44].mxu0  ;;  %v3717_v22 = vld [vmem:[%s4374_s5 + $0xa0] sm:$0xff]  }
 0x26f   : > { %v1640_v25 = vadd.f32 %v1634_v24, %v1479_v21  ;;  %v3422_v26 = vpop.f32.mrb[39].mxu1  ;;  %v3457_v27 = vpop.f32.mrb[45].mxu0  ;;  %v3716_v21 = vld [vmem:[%s4374_s5 + $0x98] sm:$0xff]  }
 0x270   : > { %v1637_v28 = vpop.f32.mrb[46].mxu0  ;;  %v3719_v26 = vld [vmem:[%s4374_s5 + $0xc0] sm:$0xff]   ;;  %v3720_v27 = vld [vmem:[%s4374_s5 + $0xb0] sm:$0xff]  }
 0x271   : > { %v3458_v29 = vpop.f32.mrb[47].mxu0  ;;  %v3721_v28 = vld [vmem:[%s4374_s5 + $0xc8] sm:$0xff]  }
 0x272   : > { %v3722_v29 = vld [vmem:[%s4374_s5 + $0xb8] sm:$0xff]  }
 0x27c   : > { %v1588_v30 = vpop.f32.mrb[40].mxu1 }
 0x27d   : > { %v1594_v31 = vadd.f32 %v1588_v30, %v1433_v5  ;;  %v3445_v32 = vpop.f32.mrb[41].mxu1  ;;  %v3723_v30 = vld [vmem:[%s4374_s5 + $0xd0] sm:$0xff]  }
 0x27e   : > { %v1591_v33 = vpop.f32.mrb[42].mxu1  ;;  %v1749_v34 = vpop.f32.mrb[48].mxu0  ;;  %v3724_v32 = vld [vmem:[%s4374_s5 + $0xd8] sm:$0xff]  }
 0x27f   : > { %v4215_v35 = vadd.f32 %v1749_v34, %v1594_v31  ;;  %v3446_v36 = vpop.f32.mrb[43].mxu1  ;;  %v3481_v37 = vpop.f32.mrb[49].mxu0  ;;  %v3725_v33 = vld [vmem:[%s4374_s5 + $0xe0] sm:$0xff]  }
 0x280   : > { %v1752_v38 = vpop.f32.mrb[50].mxu0  ;;  %v3726_v36 = vld [vmem:[%s4374_s5 + $0xe8] sm:$0xff]   ;;  %v3727_v37 = vld [vmem:[%s4374_s5 + $0x100] sm:$0xff]  }
 0x281   : > { %v3482_v39 = vpop.f32.mrb[51].mxu0 }
 0x282   : > { %v3728_v39 = vld [vmem:[%s4374_s5 + $0xf0] sm:$0xff]  }
 0x28c   : > { %v1708_v40 = vpop.f32.mrb[44].mxu1 }
 0x28d   : > { %v1714_v41 = vadd.f32 %v1708_v40, %v1553_v15  ;;  %v3469_v42 = vpop.f32.mrb[45].mxu1  ;;  %v3729_v40 = vld [vmem:[%s4374_s5 + $0x108] sm:$0xff]  }
 0x28e   : > { %v1711_v43 = vpop.f32.mrb[46].mxu1  ;;  %v1869_v45 = vpop.f32.mrb[52].mxu0  ;;  %v3731_v42 = vld [vmem:[%s4374_s5 + $0x110] sm:$0xff]  }
 0x28f   : > { %v1875_v47 = vadd.f32 %v1869_v45, %v1714_v41  ;;  %v3470_v44 = vpop.f32.mrb[47].mxu1  ;;  %v3505_v48 = vpop.f32.mrb[53].mxu0  ;;  %v3730_v41 = vld [vmem:[%s4374_s5 + $0xf8] sm:$0xff]  }
 0x290   : > { %v1872_v49 = vpop.f32.mrb[54].mxu0  ;;  %v3732_v43 = vld [vmem:[%s4374_s5 + $0x118] sm:$0xff]  }
 0x291   : > { %v1970_v50 = vadd.f32 %v4220_v46, %v1875_v47  ;;  %v3506_v51 = vpop.f32.mrb[55].mxu0 }
 0x293   : > { %v1971_v52 = vmax.f32 %v1970_v50, 0.0 }
 0x295   : > { %v1972_v54 = vpack.c.bf16 %v1971_v52, %v1971_v52 }
 0x297   : > { %v1991_v56 = vshrl.u32 %v1972_v54, 16  ;;  %3552 = vmatmul.mubr.msk.bf16.vlgmr.msra.gmra.mrb[60].mxu0 %vm452_vm1, %v1972_v54  ;;  %v2136_v11 = vrot.slane %v1972_v54, 1 }
 0x298   : > { %3568 = vmatpush3.bf16.msra.mxu0 %v3709_v53  ;;  %3575 = vmatprep.mubr.msk.bf16.mxu0 %vm3742_vm0, %v3741_v2 }
 0x299   : > { %3540 = vmatmul.mubr.msk.bf16.vlgmr.msra.gmra.mrb[56].mxu1 %vm452_vm1, %v1991_v56  ;;  %3569 = vmatprep.subr.bf16.mxu0 %v3741_v2 }
 0x29a   : > { %3556 = vmatpush3.bf16.msra.mxu1 %v3705_v55  ;;  %3563 = vmatprep.mubr.msk.bf16.mxu1 %vm3742_vm0, %v3741_v2 }
 0x29b   : > { %3557 = vmatprep.subr.bf16.mxu1 %v3741_v2 }
 0x29c   : > { %v1795_v59 = vpop.f32.mrb[48].mxu1  ;;  %3570 = vmatpush3.bf16.msra.mxu0 %v3710_v57 }
 0x29d   : > { %v1801_v61 = vadd.f32 %v1795_v59, %v1640_v25  ;;  %v3493_v62 = vpop.f32.mrb[49].mxu1  ;;  %3571 = vmatprep.subr.bf16.mxu0 %v3741_v2  ;;  %v3718_v25 = vld [vmem:[%s4374_s5 + $0xa8] sm:$0xff]  }
 0x29e   : > { %3558 = vmatpush3.bf16.msra.mxu1 %v3706_v58  ;;  %v1798_v63 = vpop.f32.mrb[50].mxu1  ;;  %v1956_v1 = vpop.f32.mrb[56].mxu0 }
 0x29f   : > { %v1962_v4 = vadd.f32 %v1956_v1, %v1801_v61  ;;  %v3494_v0 = vpop.f32.mrb[51].mxu1  ;;  %v3529_v5 = vpop.f32.mrb[57].mxu0  ;;  %3559 = vmatprep.subr.bf16.mxu1 %v3741_v2 }
 0x2a0   : > { %v1959_v6 = vpop.f32.mrb[58].mxu0  ;;  %3572 = vmatpush3.bf16.msra.mxu0 %v3712_v60 }
 0x2a1   : > { %v3530_v8 = vpop.f32.mrb[59].mxu0  ;;  %3573 = vmatprep.subr.bf16.mxu0 %v3741_v2  ;;  %v2443_v31 = vadd.f32 %v4220_v46, %v1962_v4 }
 0x2a2   : > { %3560 = vmatpush3.bf16.msra.mxu1 %v3707_v3 }
 0x2a3   : > { %3561 = vmatprep.subr.bf16.mxu1 %v3741_v2  ;;  %v2444_v34 = vmax.f32 %v2443_v31, 0.0 }
 0x2a4   : > { %3574 = vmatpush3.bf16.msra.mxu0 %v3714_v7 }
 0x2a5   : > { %3591 = vmatprep.subr.bf16.mxu0 %v3741_v2  ;;  %v2445_v38 = vpack.c.bf16 %v2444_v34, %v2444_v34 }
 0x2a6   : > { %3562 = vmatpush3.bf16.msra.mxu1 %v3708_v9 }
 0x2a7   : > { %3579 = vmatprep.subr.bf16.mxu1 %v3741_v2  ;;  %v2532_v45 = vshrl.u32 %v2445_v38, 16 }
 0x2a9   : > { %3564 = vmatmul.mubr.msk.bf16.vlgmr.msra.gmra.mrb[60].mxu1 %vm452_vm1, %v2136_v11 }
 0x2aa   : > { %3580 = vmatpush3.bf16.msra.mxu1 %v3711_v10  ;;  %3587 = vmatprep.mubr.msk.bf16.mxu1 %vm3742_vm0, %v3741_v2 }
 0x2ab   : > { %3581 = vmatprep.subr.bf16.mxu1 %v3741_v2 }
 0x2ac   : > { %v1910_v13 = vpop.f32.mrb[52].mxu1 }
 0x2ad   : > { %v1916_v14 = vadd.f32 %v1910_v13, %v4215_v35  ;;  %v3517_v15 = vpop.f32.mrb[53].mxu1 }
 0x2ae   : > { %3582 = vmatpush3.bf16.msra.mxu1 %v3713_v12  ;;  %v1913_v16 = vpop.f32.mrb[54].mxu1 }
 0x2af   : > { %v2205_v18 = vadd.f32 %v4220_v46, %v1916_v14  ;;  %v3518_v19 = vpop.f32.mrb[55].mxu1  ;;  %3583 = vmatprep.subr.bf16.mxu1 %v3741_v2  ;;  %v2612_v46 = vrot.slane %v2445_v38, 1 }
 0x2b1   : > { %v2206_v20 = vmax.f32 %v2205_v18, 0.0 }
 0x2b2   : > { %3584 = vmatpush3.bf16.msra.mxu1 %v3715_v17 }
 0x2b3   : > { %v2207_v23 = vpack.c.bf16 %v2206_v20, %v2206_v20  ;;  %3585 = vmatprep.subr.bf16.mxu1 %v3741_v2 }
 0x2b5   : > { %v2294_v24 = vshrl.u32 %v2207_v23, 16  ;;  %3576 = vmatmul.mubr.msk.bf16.vlgmr.msra.gmra.mrb[64].mxu0 %vm452_vm1, %v2207_v23  ;;  %v2374_v35 = vrot.slane %v2207_v23, 1 }
 0x2b6   : > { %3586 = vmatpush3.bf16.msra.mxu1 %v3716_v21  ;;  %3592 = vmatpush3.bf16.msra.mxu0 %v3717_v22  ;;  %v2681_v22 = vld [vmem:[%s4375_s6] sm:$0x1] }
 0x2b7   : > { %3593 = vmatprep.subr.bf16.mxu0 %v3741_v2  ;;  %3603 = vmatprep.subr.bf16.mxu1 %v3741_v2 }
 0x2b8   : > { %3599 = vmatprep.mubr.msk.bf16.mxu0 %vm3742_vm0, %v3741_v2 }
 0x2b9   : > { %3588 = vmatmul.mubr.msk.bf16.vlgmr.msra.gmra.mrb[64].mxu1 %vm452_vm1, %v2294_v24 }
 0x2ba   : > { %3594 = vmatpush3.bf16.msra.mxu0 %v3718_v25  ;;  %3604 = vmatpush3.bf16.msra.mxu1 %v3719_v26 }
 0x2bb   : > { %3595 = vmatprep.subr.bf16.mxu0 %v3741_v2  ;;  %3605 = vmatprep.subr.bf16.mxu1 %v3741_v2 }
 0x2bc   : > { %3611 = vmatprep.mubr.msk.bf16.mxu1 %vm3742_vm0, %v3741_v2 }
 0x2be   : > { %3596 = vmatpush3.bf16.msra.mxu0 %v3720_v27  ;;  %3606 = vmatpush3.bf16.msra.mxu1 %v3721_v28 }
 0x2bf   : > { %3597 = vmatprep.subr.bf16.mxu0 %v3741_v2  ;;  %3607 = vmatprep.subr.bf16.mxu1 %v3741_v2 }
 0x2c2   : > { %3598 = vmatpush3.bf16.msra.mxu0 %v3722_v29  ;;  %3608 = vmatpush3.bf16.msra.mxu1 %v3723_v30 }
 0x2c3   : > { %3609 = vmatprep.subr.bf16.mxu1 %v3741_v2  ;;  %3615 = vmatprep.subr.bf16.mxu0 %v3741_v2 }
 0x2c5   : > { %3600 = vmatmul.mubr.msk.bf16.vlgmr.msra.gmra.mrb[68].mxu0 %vm452_vm1, %v2374_v35 }
 0x2c6   : > { %3610 = vmatpush3.bf16.msra.mxu1 %v3724_v32  ;;  %3616 = vmatpush3.bf16.msra.mxu0 %v3725_v33 }
 0x2c7   : > { %3617 = vmatprep.subr.bf16.mxu0 %v3741_v2  ;;  %3627 = vmatprep.subr.bf16.mxu1 %v3741_v2 }
 0x2c8   : > { %3623 = vmatprep.mubr.msk.bf16.mxu0 %vm3742_vm0, %v3741_v2 }
 0x2c9   : > { %3612 = vmatmul.mubr.msk.bf16.vlgmr.msra.gmra.mrb[68].mxu1 %vm452_vm1, %v2445_v38 }
 0x2ca   : > { %3618 = vmatpush3.bf16.msra.mxu0 %v3726_v36  ;;  %3628 = vmatpush3.bf16.msra.mxu1 %v3727_v37 }
 0x2cb   : > { %3619 = vmatprep.subr.bf16.mxu0 %v3741_v2  ;;  %3629 = vmatprep.subr.bf16.mxu1 %v3741_v2 }
 0x2cc   : > { %3635 = vmatprep.mubr.msk.bf16.mxu1 %vm3742_vm0, %v3741_v2 }
 0x2ce   : > { %3620 = vmatpush3.bf16.msra.mxu0 %v3728_v39  ;;  %3630 = vmatpush3.bf16.msra.mxu1 %v3729_v40 }
 0x2cf   : > { %3621 = vmatprep.subr.bf16.mxu0 %v3741_v2  ;;  %3631 = vmatprep.subr.bf16.mxu1 %v3741_v2 }
 0x2d2   : > { %3622 = vmatpush3.bf16.msra.mxu0 %v3730_v41  ;;  %3632 = vmatpush3.bf16.msra.mxu1 %v3731_v42 }
 0x2d3   : > { %3633 = vmatprep.subr.bf16.mxu1 %v3741_v2 }
 0x2d5   : > { %3624 = vmatmul.mubr.msk.bf16.vlgmr.msra.gmra.mrb[72].mxu0 %vm452_vm1, %v2532_v45 }
 0x2d6   : > { %3634 = vmatpush3.bf16.msra.mxu1 %v3732_v43 }
 0x2d9   : > { %3636 = vmatmul.mubr.msk.bf16.vlgmr.msra.gmra.mrb[72].mxu1 %vm452_vm1, %v2612_v46 }
 0x36a   : > { %v2120_v47 = vpop.f32.mrb[60].mxu0 }
 0x36b   : > { %v3553_v44 = vpop.f32.mrb[61].mxu0 }
 0x36c   : > { %v2054_v48 = vpop.f32.mrb[56].mxu1  ;;  %v2123_v49 = vpop.f32.mrb[62].mxu0 }
 0x36d   : > { %v2121_v50 = vadd.f32 %v2120_v47, %v2054_v48  ;;  %v3541_v51 = vpop.f32.mrb[57].mxu1  ;;  %v3554_v52 = vpop.f32.mrb[63].mxu0 }
 0x36e   : > { %v2057_v53 = vpop.f32.mrb[58].mxu1 }
 0x36f   : > { %v3542_v54 = vpop.f32.mrb[59].mxu1 }
 0x37c   : > { %v2198_v55 = vpop.f32.mrb[60].mxu1 }
 0x37d   : > { %v2204_v56 = vadd.f32 %v2198_v55, %v2121_v50  ;;  %v3565_v57 = vpop.f32.mrb[61].mxu1 }
 0x37e   : > { %v2201_v58 = vpop.f32.mrb[62].mxu1 }
 0x37f   : > { %v3566_v2 = vpop.f32.mrb[63].mxu1 }
 0x388   : > { %v2278_v59 = vpop.f32.mrb[64].mxu0 }
 0x389   : > { %v2284_v60 = vadd.f32 %v2278_v59, %v2204_v56  ;;  %v3577_v61 = vpop.f32.mrb[65].mxu0 }
 0x38a   : > { %v2281_v62 = vpop.f32.mrb[66].mxu0 }
 0x38b   : > { %v3578_v63 = vpop.f32.mrb[67].mxu0 }
 0x38c   : > { %v2357_v1 = vpop.f32.mrb[64].mxu1 }
 0x38d   : > { %v2363_v3 = vadd.f32 %v2357_v1, %v2284_v60  ;;  %v3589_v4 = vpop.f32.mrb[65].mxu1 }
 0x38e   : > { %v2360_v0 = vpop.f32.mrb[66].mxu1 }
 0x38f   : > { %v3590_v5 = vpop.f32.mrb[67].mxu1 }
 0x398   : > { %v2436_v6 = vpop.f32.mrb[68].mxu0 }
 0x399   : > { %v2442_v7 = vadd.f32 %v2436_v6, %v2363_v3  ;;  %v3601_v8 = vpop.f32.mrb[69].mxu0 }
 0x39a   : > { %v2439_v9 = vpop.f32.mrb[70].mxu0 }
 0x39b   : > { %v3602_v10 = vpop.f32.mrb[71].mxu0 }
 0x39c   : > { %v2516_v11 = vpop.f32.mrb[68].mxu1 }
 0x39d   : > { %v2522_v12 = vadd.f32 %v2516_v11, %v2442_v7  ;;  %v3613_v13 = vpop.f32.mrb[69].mxu1 }
 0x39e   : > { %v2519_v14 = vpop.f32.mrb[70].mxu1 }
 0x39f   : > { %v3614_v15 = vpop.f32.mrb[71].mxu1 }
 0x3a8   : > { %v2595_v16 = vpop.f32.mrb[72].mxu0 }
 0x3a9   : > { %v2601_v17 = vadd.f32 %v2595_v16, %v2522_v12  ;;  %v3625_v18 = vpop.f32.mrb[73].mxu0 }
 0x3aa   : > { %v2598_v19 = vpop.f32.mrb[74].mxu0 }
 0x3ab   : > { %v3626_v20 = vpop.f32.mrb[75].mxu0 }
 0x3ac   : > { %v2674_v21 = vpop.f32.mrb[72].mxu1 }
 0x3ad   : > { %v2680_v23 = vadd.f32 %v2674_v21, %v2601_v17  ;;  %v3637_v24 = vpop.f32.mrb[73].mxu1 }
 0x3ae   : > { %v2677_v25 = vpop.f32.mrb[74].mxu1 }
 0x3af   : > { %v2682_v26 = vadd.f32 %v2681_v22, %v2680_v23  ;;  %v3638_v27 = vpop.f32.mrb[75].mxu1 }
 0x3b1   : > { %2683 = vst [vmem:[%s274_s30] sm:$0x1] %v2682_v26 }
 0x3b2 PF: > { %s17_s24 = sadd.s32 1, %s3739_s24  }
 0x3b3   : > { %p14_p4 = scmp.ge.s32.totalorder %s17_s24, 4  }
 0x3b5   :  { %16 = sbr.rel (!%p14_p4) target bundleno = 1 (0x1), region = 94 }

</bundles_post_ra>
